<compile_context>
chip_gen: v5e
topology: v5e:2x2
jax: 0.10.0
libtpu: 0.0.40
codegen_flags: <defaults>
</compile_context>

<pallas_src>
import functools
import math

import jax
import jax.numpy as jnp
from jax.experimental import pallas as pl
from jax.experimental.pallas import tpu as pltpu


# ----------------------------- config (small) --------------------------------
BATCH = 2
NUM_PATCHES = 16
HIDDEN = 64
INTERMEDIATE = 128
NUM_HEADS = 4
HEAD_DIM = HIDDEN // NUM_HEADS
LAYER_NORM_EPS = 1e-6
# attention_dropout_rate = 0.0 -> dropout is an identity; not emitted in the kernel.


# ------------------------------- Pallas kernel --------------------------------
def _encoder_layer_kernel(
    x_ref,        # (B*N, D)
    wqkv_ref,     # (D, 3D)    [scale*wq | wk | wv] pre-transposed, scale folded into wq
    fc1w_ref,     # (D, I)
    wof2_ref,     # (D+I, D)   rows [0:D]=wo, rows [D:D+I]=fc2_w
    vecd_ref,     # (8, D)     rows: ln1_w, ln1_b, bo, fc2_b, ln2_w, ln2_b, 0, 0
    vecw_ref,     # (2, max(3D, I)) rows: [scale*bq|bk|bv], fc1_b (zero padded)
    out_ref,      # (B*N, D)
    *, batch, seq, num_heads, head_dim, hidden, inter, eps,
):
    B, N, D, I, H, hd = batch, seq, hidden, inter, num_heads, head_dim
    BN = B * N

    x = x_ref[...]                                   # (BN, D)

    # packed small parameters (one DMA per slab; static sub-slices of the ref view are free)
    ln1_w = vecd_ref[0:1, :]
    ln1_b = vecd_ref[1:2, :]
    bo    = vecd_ref[2:3, :]
    fc2_b = vecd_ref[3:4, :]
    ln2_w = vecd_ref[4:5, :]
    ln2_b = vecd_ref[5:6, :]
    b_qkv = vecw_ref[0:1, 0:3 * D]                   # (1, 3D)
    fc1_b = vecw_ref[1:2, 0:I]                       # (1, I)

    def layer_norm(v, w, b):
        mean = jnp.mean(v, axis=-1, keepdims=True)
        cent = v - mean
        var = jnp.mean(cent * cent, axis=-1, keepdims=True)
        return cent * jax.lax.rsqrt(var + eps) * w + b

    # ---- LayerNorm 1 ----
    h = layer_norm(x, ln1_w, ln1_b)                  # (BN, D)

    # ---- fused QKV projection: one MXU pass instead of three ----
    qkv = jnp.dot(h, wqkv_ref[...], preferred_element_type=jnp.float32) + b_qkv  # (BN, 3D)
    qkv3 = qkv.reshape(B, N, 3 * D)                  # leading-dim split: free

    # ---- self attention, batched over B; output projection folded per head ----
    # Q is already scaled (scale folded into wq/bq host-side; hd**-0.5 = 0.25 is exact).
    acc = jnp.zeros((BN, D), jnp.float32)
    for hh in range(H):                              # static unrolled loop over heads
        q_off = hh * hd
        k_off = D + hh * hd
        v_off = 2 * D + hh * hd
        qh = qkv3[:, :, q_off:q_off + hd]            # (B, N, hd)
        kh = qkv3[:, :, k_off:k_off + hd]            # (B, N, hd)
        vh = qkv3[:, :, v_off:v_off + hd]            # (B, N, hd)

        s = jnp.einsum("bnd,bmd->bnm", qh, kh,
                       preferred_element_type=jnp.float32)                # (B, N, N)
        s = s - jnp.max(s, axis=-1, keepdims=True)
        p = jnp.exp(s)
        p = p * pl.reciprocal(jnp.sum(p, axis=-1, keepdims=True), approx=True)
        pv = jnp.einsum("bnm,bmd->bnd", p, vh,
                        preferred_element_type=jnp.float32)               # (B, N, hd)

        # fold this head's slice of the output projection; no concat is materialized
        acc = acc + jnp.dot(pv.reshape(BN, hd), wof2_ref[q_off:q_off + hd, :],
                            preferred_element_type=jnp.float32)
    attn = acc + bo                                  # (BN, D)

    # ---- MLP (fc1 -> tanh-GELU -> fc2) ----
    # NOTE: the reference module's `self.act = F.gelu(self.embed_dim, 'tanh')` is a bug in
    # the original code; the intended op is GELU with the tanh approximation.
    h1 = jnp.dot(attn, fc1w_ref[...], preferred_element_type=jnp.float32) + fc1_b
    c = math.sqrt(2.0 / math.pi)
    g = 0.5 * h1 * (1.0 + jnp.tanh(c * (h1 + 0.044715 * h1 * h1 * h1)))
    h2 = jnp.dot(g, wof2_ref[D:D + I, :], preferred_element_type=jnp.float32) + fc2_b

    # ---- LayerNorm 2 ----
    out_ref[...] = layer_norm(h2, ln2_w, ln2_b).astype(out_ref.dtype)


# ------------------------------- wrapper --------------------------------------
def siglip_encoder_layer(x, params):
    """x: (B, N, D) float32. params: dict of pre-transposed weights ((in, out) layout)."""
    B, N, D = x.shape
    I = params["fc1_w"].shape[1]
    H, hd = NUM_HEADS, HEAD_DIM
    scale = float(hd) ** -0.5   # 0.25 — exact power of two; fold into wq/bq bit-exactly

    # ---- host-side packing (free XLA plumbing; cuts parameter DMAs 17 -> 5) ----
    w_qkv = jnp.concatenate([params["wq"] * scale, params["wk"], params["wv"]],
                            axis=1)                                              # (D, 3D)
    w_of2 = jnp.concatenate([params["wo"], params["fc2_w"]], axis=0)             # (D+I, D)
    fc1_w = params["fc1_w"]                                                      # (D, I)

    vec_d = jnp.concatenate(
        [params["ln1_w"], params["ln1_b"], params["bo"], params["fc2_b"],
         params["ln2_w"], params["ln2_b"], jnp.zeros((2, D), jnp.float32)],
        axis=0)                                                                  # (8, D)

    wide = max(3 * D, I)
    b_qkv = jnp.concatenate([params["bq"] * scale, params["bk"], params["bv"]],
                            axis=1)                                              # (1, 3D)
    b_qkv = jnp.pad(b_qkv, ((0, 0), (0, wide - 3 * D)))
    fc1_b = jnp.pad(params["fc1_b"], ((0, 0), (0, wide - I)))
    vec_w = jnp.concatenate([b_qkv, fc1_b], axis=0)                              # (2, wide)

    x_flat = x.reshape(B * N, D)
    operands = [x_flat, w_qkv, fc1_w, w_of2, vec_d, vec_w]

    def full_spec(a):
        nd = a.ndim
        return pl.BlockSpec(a.shape, lambda i, _nd=nd: (0,) * _nd)

    kernel = functools.partial(
        _encoder_layer_kernel,
        batch=B, seq=N, num_heads=H, head_dim=hd, hidden=D, inter=I,
        eps=LAYER_NORM_EPS,
    )

    out = pl.pallas_call(
        kernel,
        out_shape=jax.ShapeDtypeStruct((B * N, D), x.dtype),
        grid=(1,),  # single program: whole batch in one step (grid overhead dominates B=2)
        in_specs=[full_spec(a) for a in operands],
        out_specs=pl.BlockSpec((B * N, D), lambda i: (0, 0)),
        compiler_params=pltpu.CompilerParams(
            dimension_semantics=("arbitrary",),
        ),
    )(*operands)
    return out.reshape(B, N, D)


# --------------------------- pure-JAX reference --------------------------------
def reference_encoder_layer(x, params):
    eps = LAYER_NORM_EPS

    def ln(v, w, b):
        m = jnp.mean(v, axis=-1, keepdims=True)
        var = jnp.mean((v - m) ** 2, axis=-1, keepdims=True)
        return (v - m) / jnp.sqrt(var + eps) * w + b

    B, N, D = x.shape
    H, hd = NUM_HEADS, HEAD_DIM

    h = ln(x, params["ln1_w"], params["ln1_b"])
    q = h @ params["wq"] + params["bq"]
    k = h @ params["wk"] + params["bk"]
    v = h @ params["wv"] + params["bv"]
    q = q.reshape(B, N, H, hd).transpose(0, 2, 1, 3)
    k = k.reshape(B, N, H, hd).transpose(0, 2, 1, 3)
    v = v.reshape(B, N, H, hd).transpose(0, 2, 1, 3)
    s = jnp.einsum("bhnd,bhmd->bhnm", q, k) * (hd ** -0.5)
    p = jax.nn.softmax(s.astype(jnp.float32), axis=-1).astype(s.dtype)
    a = jnp.einsum("bhnm,bhmd->bhnd", p, v)
    a = a.transpose(0, 2, 1, 3).reshape(B, N, D)
    a = a @ params["wo"] + params["bo"]
    h1 = a @ params["fc1_w"] + params["fc1_b"]
    g = 0.5 * h1 * (1.0 + jnp.tanh(math.sqrt(2.0 / math.pi) * (h1 + 0.044715 * h1 ** 3)))
    h2 = g @ params["fc2_w"] + params["fc2_b"]
    return ln(h2, params["ln2_w"], params["ln2_b"])


# --------------------------------- main ----------------------------------------
def _make_params(key):
    keys = jax.random.split(key, 16)
    D, I = HIDDEN, INTERMEDIATE

    def w(k, shape, scale=0.02):
        return (scale * jax.random.normal(k, shape)).astype(jnp.float32)

    return {
        "ln1_w": jnp.ones((1, D), jnp.float32),
        "ln1_b": w(keys[0], (1, D)),
        "wq": w(keys[1], (D, D)), "bq": w(keys[2], (1, D)),
        "wk": w(keys[3], (D, D)), "bk": w(keys[4], (1, D)),
        "wv": w(keys[5], (D, D)), "bv": w(keys[6], (1, D)),
        "wo": w(keys[7], (D, D)), "bo": w(keys[8], (1, D)),
        "fc1_w": w(keys[9], (D, I)), "fc1_b": w(keys[10], (1, I)),
        "fc2_w": w(keys[11], (I, D)), "fc2_b": w(keys[12], (1, D)),
        "ln2_w": jnp.ones((1, D), jnp.float32),
        "ln2_b": w(keys[13], (1, D)),
    }


if __name__ == "__main__":
    key = jax.random.PRNGKey(0)
    k_x, k_p = jax.random.split(key)
    x = jax.random.normal(k_x, (BATCH, NUM_PATCHES, HIDDEN), dtype=jnp.float32)
    params = _make_params(k_p)

    out = jax.block_until_ready(siglip_encoder_layer(x, params))
    ref = jax.block_until_ready(reference_encoder_layer(x, params))

    assert out.shape == (BATCH, NUM_PATCHES, HIDDEN)
    max_err = float(jnp.max(jnp.abs(out - ref)))
    # 1e-3 tolerance absorbs the approx (EUP) softmax reciprocal; exact recip matches ~1e-6.
    assert jnp.allclose(out, ref, atol=1e-3, rtol=1e-3), max_err

    print("KERNEL_OK")
</pallas_src>

<mosaic_0001>
module attributes {stable_mosaic.version = 11 : i64} {
  func.func @_encoder_layer_kernel(%arg0: i32, %arg1: memref<32x64xf32, #tpu.memory_space<vmem>>, %arg2: memref<64x192xf32, #tpu.memory_space<vmem>>, %arg3: memref<64x128xf32, #tpu.memory_space<vmem>>, %arg4: memref<192x64xf32, #tpu.memory_space<vmem>>, %arg5: memref<8x64xf32, #tpu.memory_space<vmem>>, %arg6: memref<2x192xf32, #tpu.memory_space<vmem>>, %arg7: memref<32x64xf32, #tpu.memory_space<vmem>>) attributes {dimension_semantics = [#tpu.dimension_semantics<arbitrary>], iteration_bounds = array<i64: 1>, scalar_prefetch = 0 : i64, scratch_operands = 0 : i64, tpu.core_type = #tpu.core_type<tc>, window_params = [{pipeline_mode = #tpu.pipeline_mode<synchronous>, transform_indices = @transform_0, window_bounds = array<i64: 32, 64>}, {pipeline_mode = #tpu.pipeline_mode<synchronous>, transform_indices = @transform_1, window_bounds = array<i64: 64, 192>}, {pipeline_mode = #tpu.pipeline_mode<synchronous>, transform_indices = @transform_2, window_bounds = array<i64: 64, 128>}, {pipeline_mode = #tpu.pipeline_mode<synchronous>, transform_indices = @transform_3, window_bounds = array<i64: 192, 64>}, {pipeline_mode = #tpu.pipeline_mode<synchronous>, transform_indices = @transform_4, window_bounds = array<i64: 8, 64>}, {pipeline_mode = #tpu.pipeline_mode<synchronous>, transform_indices = @transform_5, window_bounds = array<i64: 2, 192>}, {pipeline_mode = #tpu.pipeline_mode<synchronous>, transform_indices = @transform_6, window_bounds = array<i64: 32, 64>}]} {
    %c0 = arith.constant 0 : index
    %c0_0 = arith.constant 0 : index
    %0 = vector.load %arg1[%c0, %c0_0] : memref<32x64xf32, #tpu.memory_space<vmem>>, vector<32x64xf32>
    %c0_1 = arith.constant 0 : index
    %c0_2 = arith.constant 0 : index
    %1 = vector.load %arg5[%c0_1, %c0_2] : memref<8x64xf32, #tpu.memory_space<vmem>>, vector<1x64xf32>
    %c1 = arith.constant 1 : index
    %c0_3 = arith.constant 0 : index
    %2 = vector.load %arg5[%c1, %c0_3] : memref<8x64xf32, #tpu.memory_space<vmem>>, vector<1x64xf32>
    %c2 = arith.constant 2 : index
    %c0_4 = arith.constant 0 : index
    %3 = vector.load %arg5[%c2, %c0_4] : memref<8x64xf32, #tpu.memory_space<vmem>>, vector<1x64xf32>
    %c3 = arith.constant 3 : index
    %c0_5 = arith.constant 0 : index
    %4 = vector.load %arg5[%c3, %c0_5] : memref<8x64xf32, #tpu.memory_space<vmem>>, vector<1x64xf32>
    %c4 = arith.constant 4 : index
    %c0_6 = arith.constant 0 : index
    %5 = vector.load %arg5[%c4, %c0_6] : memref<8x64xf32, #tpu.memory_space<vmem>>, vector<1x64xf32>
    %c5 = arith.constant 5 : index
    %c0_7 = arith.constant 0 : index
    %6 = vector.load %arg5[%c5, %c0_7] : memref<8x64xf32, #tpu.memory_space<vmem>>, vector<1x64xf32>
    %c0_8 = arith.constant 0 : index
    %c0_9 = arith.constant 0 : index
    %7 = vector.load %arg6[%c0_8, %c0_9] : memref<2x192xf32, #tpu.memory_space<vmem>>, vector<1x192xf32>
    %c1_10 = arith.constant 1 : index
    %c0_11 = arith.constant 0 : index
    %8 = vector.load %arg6[%c1_10, %c0_11] : memref<2x192xf32, #tpu.memory_space<vmem>>, vector<1x128xf32>
    %cst = arith.constant dense<0.000000e+00> : vector<32xf32>
    %9 = vector.multi_reduction <add>, %0, %cst [1] : vector<32x64xf32> to vector<32xf32>
    %10 = vector.shape_cast %9 : vector<32xf32> to vector<32x1xf32>
    %cst_12 = arith.constant 6.400000e+01 : f32
    %11 = vector.broadcast %cst_12 : f32 to vector<32x1xf32>
    %12 = arith.divf %10, %11 : vector<32x1xf32>
    %13 = vector.broadcast %12 : vector<32x1xf32> to vector<32x64xf32>
    %14 = arith.subf %0, %13 : vector<32x64xf32>
    %15 = arith.mulf %14, %14 : vector<32x64xf32>
    %cst_13 = arith.constant dense<0.000000e+00> : vector<32xf32>
    %16 = vector.multi_reduction <add>, %15, %cst_13 [1] : vector<32x64xf32> to vector<32xf32>
    %17 = vector.shape_cast %16 : vector<32xf32> to vector<32x1xf32>
    %cst_14 = arith.constant 6.400000e+01 : f32
    %18 = vector.broadcast %cst_14 : f32 to vector<32x1xf32>
    %19 = arith.divf %17, %18 : vector<32x1xf32>
    %cst_15 = arith.constant 9.99999997E-7 : f32
    %20 = vector.broadcast %cst_15 : f32 to vector<32x1xf32>
    %21 = arith.addf %19, %20 : vector<32x1xf32>
    %22 = math.rsqrt %21 : vector<32x1xf32>
    %23 = vector.broadcast %22 : vector<32x1xf32> to vector<32x64xf32>
    %24 = arith.mulf %14, %23 : vector<32x64xf32>
    %25 = vector.broadcast %1 : vector<1x64xf32> to vector<32x64xf32>
    %26 = arith.mulf %24, %25 : vector<32x64xf32>
    %27 = vector.broadcast %2 : vector<1x64xf32> to vector<32x64xf32>
    %28 = arith.addf %26, %27 : vector<32x64xf32>
    %c0_16 = arith.constant 0 : index
    %c0_17 = arith.constant 0 : index
    %29 = vector.load %arg2[%c0_16, %c0_17] : memref<64x192xf32, #tpu.memory_space<vmem>>, vector<64x192xf32>
    %cst_18 = arith.constant dense<0.000000e+00> : vector<32x192xf32>
    %30 = tpu.matmul %28, %29, %cst_18 {dimension_numbers = #tpu.dot_dimension_numbers<[1], [0], [0], [1], [0, 0, 1, 1], [], []>} : vector<32x64xf32>, vector<64x192xf32>, vector<32x192xf32> -> vector<32x192xf32>
    %31 = vector.broadcast %7 : vector<1x192xf32> to vector<32x192xf32>
    %32 = arith.addf %30, %31 : vector<32x192xf32>
    %33 = vector.shape_cast %32 : vector<32x192xf32> to vector<2x16x192xf32>
    %cst_19 = arith.constant 0.000000e+00 : f32
    %34 = vector.broadcast %cst_19 : f32 to vector<32x64xf32>
    %35 = vector.extract_strided_slice %33 {offsets = [0, 0, 0], sizes = [2, 16, 16], strides = [1, 1, 1]} : vector<2x16x192xf32> to vector<2x16x16xf32>
    %36 = vector.extract_strided_slice %33 {offsets = [0, 0, 64], sizes = [2, 16, 16], strides = [1, 1, 1]} : vector<2x16x192xf32> to vector<2x16x16xf32>
    %37 = vector.extract_strided_slice %33 {offsets = [0, 0, 128], sizes = [2, 16, 16], strides = [1, 1, 1]} : vector<2x16x192xf32> to vector<2x16x16xf32>
    "tpu.trace_start"() <{level = 10 : i32, message = "bnd,bmd->bnm"}> : () -> ()
    %cst_20 = arith.constant dense<0.000000e+00> : vector<2x16x16xf32>
    %38 = tpu.matmul %35, %36, %cst_20 {dimension_numbers = #tpu.dot_dimension_numbers<[2], [2], [1], [1], [0, 0, 0, 1, 1, 1], [0], [0]>} : vector<2x16x16xf32>, vector<2x16x16xf32>, vector<2x16x16xf32> -> vector<2x16x16xf32>
    "tpu.trace_stop"() : () -> ()
    %cst_21 = arith.constant dense<0xFF800000> : vector<2x16xf32>
    %39 = vector.multi_reduction <maximumf>, %38, %cst_21 [2] : vector<2x16x16xf32> to vector<2x16xf32>
    %40 = vector.shape_cast %39 : vector<2x16xf32> to vector<2x16x1xf32>
    %41 = vector.broadcast %40 : vector<2x16x1xf32> to vector<2x16x16xf32>
    %42 = arith.subf %38, %41 : vector<2x16x16xf32>
    %43 = math.exp %42 : vector<2x16x16xf32>
    %cst_22 = arith.constant dense<0.000000e+00> : vector<2x16xf32>
    %44 = vector.multi_reduction <add>, %43, %cst_22 [2] : vector<2x16x16xf32> to vector<2x16xf32>
    %45 = vector.shape_cast %44 : vector<2x16xf32> to vector<2x16x1xf32>
    %46 = tpu.reciprocal %45 {approx = true} : vector<2x16x1xf32> -> vector<2x16x1xf32>
    %47 = vector.broadcast %46 : vector<2x16x1xf32> to vector<2x16x16xf32>
    %48 = arith.mulf %43, %47 : vector<2x16x16xf32>
    "tpu.trace_start"() <{level = 10 : i32, message = "bnm,bmd->bnd"}> : () -> ()
    %cst_23 = arith.constant dense<0.000000e+00> : vector<2x16x16xf32>
    %49 = tpu.matmul %48, %37, %cst_23 {dimension_numbers = #tpu.dot_dimension_numbers<[2], [1], [1], [2], [0, 0, 0, 1, 1, 2], [0], [0]>} : vector<2x16x16xf32>, vector<2x16x16xf32>, vector<2x16x16xf32> -> vector<2x16x16xf32>
    "tpu.trace_stop"() : () -> ()
    %50 = vector.shape_cast %49 : vector<2x16x16xf32> to vector<32x16xf32>
    %c0_24 = arith.constant 0 : index
    %c0_25 = arith.constant 0 : index
    %51 = vector.load %arg4[%c0_24, %c0_25] : memref<192x64xf32, #tpu.memory_space<vmem>>, vector<16x64xf32>
    %cst_26 = arith.constant dense<0.000000e+00> : vector<32x64xf32>
    %52 = tpu.matmul %50, %51, %cst_26 {dimension_numbers = #tpu.dot_dimension_numbers<[1], [0], [0], [1], [0, 0, 1, 1], [], []>} : vector<32x16xf32>, vector<16x64xf32>, vector<32x64xf32> -> vector<32x64xf32>
    %53 = arith.addf %34, %52 : vector<32x64xf32>
    %54 = vector.extract_strided_slice %33 {offsets = [0, 0, 16], sizes = [2, 16, 16], strides = [1, 1, 1]} : vector<2x16x192xf32> to vector<2x16x16xf32>
    %55 = vector.extract_strided_slice %33 {offsets = [0, 0, 80], sizes = [2, 16, 16], strides = [1, 1, 1]} : vector<2x16x192xf32> to vector<2x16x16xf32>
    %56 = vector.extract_strided_slice %33 {offsets = [0, 0, 144], sizes = [2, 16, 16], strides = [1, 1, 1]} : vector<2x16x192xf32> to vector<2x16x16xf32>
    "tpu.trace_start"() <{level = 10 : i32, message = "bnd,bmd->bnm"}> : () -> ()
    %cst_27 = arith.constant dense<0.000000e+00> : vector<2x16x16xf32>
    %57 = tpu.matmul %54, %55, %cst_27 {dimension_numbers = #tpu.dot_dimension_numbers<[2], [2], [1], [1], [0, 0, 0, 1, 1, 1], [0], [0]>} : vector<2x16x16xf32>, vector<2x16x16xf32>, vector<2x16x16xf32> -> vector<2x16x16xf32>
    "tpu.trace_stop"() : () -> ()
    %cst_28 = arith.constant dense<0xFF800000> : vector<2x16xf32>
    %58 = vector.multi_reduction <maximumf>, %57, %cst_28 [2] : vector<2x16x16xf32> to vector<2x16xf32>
    %59 = vector.shape_cast %58 : vector<2x16xf32> to vector<2x16x1xf32>
    %60 = vector.broadcast %59 : vector<2x16x1xf32> to vector<2x16x16xf32>
    %61 = arith.subf %57, %60 : vector<2x16x16xf32>
    %62 = math.exp %61 : vector<2x16x16xf32>
    %cst_29 = arith.constant dense<0.000000e+00> : vector<2x16xf32>
    %63 = vector.multi_reduction <add>, %62, %cst_29 [2] : vector<2x16x16xf32> to vector<2x16xf32>
    %64 = vector.shape_cast %63 : vector<2x16xf32> to vector<2x16x1xf32>
    %65 = tpu.reciprocal %64 {approx = true} : vector<2x16x1xf32> -> vector<2x16x1xf32>
    %66 = vector.broadcast %65 : vector<2x16x1xf32> to vector<2x16x16xf32>
    %67 = arith.mulf %62, %66 : vector<2x16x16xf32>
    "tpu.trace_start"() <{level = 10 : i32, message = "bnm,bmd->bnd"}> : () -> ()
    %cst_30 = arith.constant dense<0.000000e+00> : vector<2x16x16xf32>
    %68 = tpu.matmul %67, %56, %cst_30 {dimension_numbers = #tpu.dot_dimension_numbers<[2], [1], [1], [2], [0, 0, 0, 1, 1, 2], [0], [0]>} : vector<2x16x16xf32>, vector<2x16x16xf32>, vector<2x16x16xf32> -> vector<2x16x16xf32>
    "tpu.trace_stop"() : () -> ()
    %69 = vector.shape_cast %68 : vector<2x16x16xf32> to vector<32x16xf32>
    %c16 = arith.constant 16 : index
    %c0_31 = arith.constant 0 : index
    %70 = vector.load %arg4[%c16, %c0_31] : memref<192x64xf32, #tpu.memory_space<vmem>>, vector<16x64xf32>
    %cst_32 = arith.constant dense<0.000000e+00> : vector<32x64xf32>
    %71 = tpu.matmul %69, %70, %cst_32 {dimension_numbers = #tpu.dot_dimension_numbers<[1], [0], [0], [1], [0, 0, 1, 1], [], []>} : vector<32x16xf32>, vector<16x64xf32>, vector<32x64xf32> -> vector<32x64xf32>
    %72 = arith.addf %53, %71 : vector<32x64xf32>
    %73 = vector.extract_strided_slice %33 {offsets = [0, 0, 32], sizes = [2, 16, 16], strides = [1, 1, 1]} : vector<2x16x192xf32> to vector<2x16x16xf32>
    %74 = vector.extract_strided_slice %33 {offsets = [0, 0, 96], sizes = [2, 16, 16], strides = [1, 1, 1]} : vector<2x16x192xf32> to vector<2x16x16xf32>
    %75 = vector.extract_strided_slice %33 {offsets = [0, 0, 160], sizes = [2, 16, 16], strides = [1, 1, 1]} : vector<2x16x192xf32> to vector<2x16x16xf32>
    "tpu.trace_start"() <{level = 10 : i32, message = "bnd,bmd->bnm"}> : () -> ()
    %cst_33 = arith.constant dense<0.000000e+00> : vector<2x16x16xf32>
    %76 = tpu.matmul %73, %74, %cst_33 {dimension_numbers = #tpu.dot_dimension_numbers<[2], [2], [1], [1], [0, 0, 0, 1, 1, 1], [0], [0]>} : vector<2x16x16xf32>, vector<2x16x16xf32>, vector<2x16x16xf32> -> vector<2x16x16xf32>
    "tpu.trace_stop"() : () -> ()
    %cst_34 = arith.constant dense<0xFF800000> : vector<2x16xf32>
    %77 = vector.multi_reduction <maximumf>, %76, %cst_34 [2] : vector<2x16x16xf32> to vector<2x16xf32>
    %78 = vector.shape_cast %77 : vector<2x16xf32> to vector<2x16x1xf32>
    %79 = vector.broadcast %78 : vector<2x16x1xf32> to vector<2x16x16xf32>
    %80 = arith.subf %76, %79 : vector<2x16x16xf32>
    %81 = math.exp %80 : vector<2x16x16xf32>
    %cst_35 = arith.constant dense<0.000000e+00> : vector<2x16xf32>
    %82 = vector.multi_reduction <add>, %81, %cst_35 [2] : vector<2x16x16xf32> to vector<2x16xf32>
    %83 = vector.shape_cast %82 : vector<2x16xf32> to vector<2x16x1xf32>
    %84 = tpu.reciprocal %83 {approx = true} : vector<2x16x1xf32> -> vector<2x16x1xf32>
    %85 = vector.broadcast %84 : vector<2x16x1xf32> to vector<2x16x16xf32>
    %86 = arith.mulf %81, %85 : vector<2x16x16xf32>
    "tpu.trace_start"() <{level = 10 : i32, message = "bnm,bmd->bnd"}> : () -> ()
    %cst_36 = arith.constant dense<0.000000e+00> : vector<2x16x16xf32>
    %87 = tpu.matmul %86, %75, %cst_36 {dimension_numbers = #tpu.dot_dimension_numbers<[2], [1], [1], [2], [0, 0, 0, 1, 1, 2], [0], [0]>} : vector<2x16x16xf32>, vector<2x16x16xf32>, vector<2x16x16xf32> -> vector<2x16x16xf32>
    "tpu.trace_stop"() : () -> ()
    %88 = vector.shape_cast %87 : vector<2x16x16xf32> to vector<32x16xf32>
    %c32 = arith.constant 32 : index
    %c0_37 = arith.constant 0 : index
    %89 = vector.load %arg4[%c32, %c0_37] : memref<192x64xf32, #tpu.memory_space<vmem>>, vector<16x64xf32>
    %cst_38 = arith.constant dense<0.000000e+00> : vector<32x64xf32>
    %90 = tpu.matmul %88, %89, %cst_38 {dimension_numbers = #tpu.dot_dimension_numbers<[1], [0], [0], [1], [0, 0, 1, 1], [], []>} : vector<32x16xf32>, vector<16x64xf32>, vector<32x64xf32> -> vector<32x64xf32>
    %91 = arith.addf %72, %90 : vector<32x64xf32>
    %92 = vector.extract_strided_slice %33 {offsets = [0, 0, 48], sizes = [2, 16, 16], strides = [1, 1, 1]} : vector<2x16x192xf32> to vector<2x16x16xf32>
    %93 = vector.extract_strided_slice %33 {offsets = [0, 0, 112], sizes = [2, 16, 16], strides = [1, 1, 1]} : vector<2x16x192xf32> to vector<2x16x16xf32>
    %94 = vector.extract_strided_slice %33 {offsets = [0, 0, 176], sizes = [2, 16, 16], strides = [1, 1, 1]} : vector<2x16x192xf32> to vector<2x16x16xf32>
    "tpu.trace_start"() <{level = 10 : i32, message = "bnd,bmd->bnm"}> : () -> ()
    %cst_39 = arith.constant dense<0.000000e+00> : vector<2x16x16xf32>
    %95 = tpu.matmul %92, %93, %cst_39 {dimension_numbers = #tpu.dot_dimension_numbers<[2], [2], [1], [1], [0, 0, 0, 1, 1, 1], [0], [0]>} : vector<2x16x16xf32>, vector<2x16x16xf32>, vector<2x16x16xf32> -> vector<2x16x16xf32>
    "tpu.trace_stop"() : () -> ()
    %cst_40 = arith.constant dense<0xFF800000> : vector<2x16xf32>
    %96 = vector.multi_reduction <maximumf>, %95, %cst_40 [2] : vector<2x16x16xf32> to vector<2x16xf32>
    %97 = vector.shape_cast %96 : vector<2x16xf32> to vector<2x16x1xf32>
    %98 = vector.broadcast %97 : vector<2x16x1xf32> to vector<2x16x16xf32>
    %99 = arith.subf %95, %98 : vector<2x16x16xf32>
    %100 = math.exp %99 : vector<2x16x16xf32>
    %cst_41 = arith.constant dense<0.000000e+00> : vector<2x16xf32>
    %101 = vector.multi_reduction <add>, %100, %cst_41 [2] : vector<2x16x16xf32> to vector<2x16xf32>
    %102 = vector.shape_cast %101 : vector<2x16xf32> to vector<2x16x1xf32>
    %103 = tpu.reciprocal %102 {approx = true} : vector<2x16x1xf32> -> vector<2x16x1xf32>
    %104 = vector.broadcast %103 : vector<2x16x1xf32> to vector<2x16x16xf32>
    %105 = arith.mulf %100, %104 : vector<2x16x16xf32>
    "tpu.trace_start"() <{level = 10 : i32, message = "bnm,bmd->bnd"}> : () -> ()
    %cst_42 = arith.constant dense<0.000000e+00> : vector<2x16x16xf32>
    %106 = tpu.matmul %105, %94, %cst_42 {dimension_numbers = #tpu.dot_dimension_numbers<[2], [1], [1], [2], [0, 0, 0, 1, 1, 2], [0], [0]>} : vector<2x16x16xf32>, vector<2x16x16xf32>, vector<2x16x16xf32> -> vector<2x16x16xf32>
    "tpu.trace_stop"() : () -> ()
    %107 = vector.shape_cast %106 : vector<2x16x16xf32> to vector<32x16xf32>
    %c48 = arith.constant 48 : index
    %c0_43 = arith.constant 0 : index
    %108 = vector.load %arg4[%c48, %c0_43] : memref<192x64xf32, #tpu.memory_space<vmem>>, vector<16x64xf32>
    %cst_44 = arith.constant dense<0.000000e+00> : vector<32x64xf32>
    %109 = tpu.matmul %107, %108, %cst_44 {dimension_numbers = #tpu.dot_dimension_numbers<[1], [0], [0], [1], [0, 0, 1, 1], [], []>} : vector<32x16xf32>, vector<16x64xf32>, vector<32x64xf32> -> vector<32x64xf32>
    %110 = arith.addf %91, %109 : vector<32x64xf32>
    %111 = vector.broadcast %3 : vector<1x64xf32> to vector<32x64xf32>
    %112 = arith.addf %110, %111 : vector<32x64xf32>
    %c0_45 = arith.constant 0 : index
    %c0_46 = arith.constant 0 : index
    %113 = vector.load %arg3[%c0_45, %c0_46] : memref<64x128xf32, #tpu.memory_space<vmem>>, vector<64x128xf32>
    %cst_47 = arith.constant dense<0.000000e+00> : vector<32x128xf32>
    %114 = tpu.matmul %112, %113, %cst_47 {dimension_numbers = #tpu.dot_dimension_numbers<[1], [0], [0], [1], [0, 0, 1, 1], [], []>} : vector<32x64xf32>, vector<64x128xf32>, vector<32x128xf32> -> vector<32x128xf32>
    %115 = vector.broadcast %8 : vector<1x128xf32> to vector<32x128xf32>
    %116 = arith.addf %114, %115 : vector<32x128xf32>
    %cst_48 = arith.constant 5.000000e-01 : f32
    %117 = vector.broadcast %cst_48 : f32 to vector<32x128xf32>
    %118 = arith.mulf %117, %116 : vector<32x128xf32>
    %cst_49 = arith.constant 4.471500e-02 : f32
    %119 = vector.broadcast %cst_49 : f32 to vector<32x128xf32>
    %120 = arith.mulf %119, %116 : vector<32x128xf32>
    %121 = arith.mulf %120, %116 : vector<32x128xf32>
    %122 = arith.mulf %121, %116 : vector<32x128xf32>
    %123 = arith.addf %116, %122 : vector<32x128xf32>
    %cst_50 = arith.constant 0.797884583 : f32
    %124 = vector.broadcast %cst_50 : f32 to vector<32x128xf32>
    %125 = arith.mulf %124, %123 : vector<32x128xf32>
    %126 = math.tanh %125 : vector<32x128xf32>
    %cst_51 = arith.constant 1.000000e+00 : f32
    %127 = vector.broadcast %cst_51 : f32 to vector<32x128xf32>
    %128 = arith.addf %127, %126 : vector<32x128xf32>
    %129 = arith.mulf %118, %128 : vector<32x128xf32>
    %c64 = arith.constant 64 : index
    %c0_52 = arith.constant 0 : index
    %130 = vector.load %arg4[%c64, %c0_52] : memref<192x64xf32, #tpu.memory_space<vmem>>, vector<128x64xf32>
    %cst_53 = arith.constant dense<0.000000e+00> : vector<32x64xf32>
    %131 = tpu.matmul %129, %130, %cst_53 {dimension_numbers = #tpu.dot_dimension_numbers<[1], [0], [0], [1], [0, 0, 1, 1], [], []>} : vector<32x128xf32>, vector<128x64xf32>, vector<32x64xf32> -> vector<32x64xf32>
    %132 = vector.broadcast %4 : vector<1x64xf32> to vector<32x64xf32>
    %133 = arith.addf %131, %132 : vector<32x64xf32>
    %cst_54 = arith.constant dense<0.000000e+00> : vector<32xf32>
    %134 = vector.multi_reduction <add>, %133, %cst_54 [1] : vector<32x64xf32> to vector<32xf32>
    %135 = vector.shape_cast %134 : vector<32xf32> to vector<32x1xf32>
    %cst_55 = arith.constant 6.400000e+01 : f32
    %136 = vector.broadcast %cst_55 : f32 to vector<32x1xf32>
    %137 = arith.divf %135, %136 : vector<32x1xf32>
    %138 = vector.broadcast %137 : vector<32x1xf32> to vector<32x64xf32>
    %139 = arith.subf %133, %138 : vector<32x64xf32>
    %140 = arith.mulf %139, %139 : vector<32x64xf32>
    %cst_56 = arith.constant dense<0.000000e+00> : vector<32xf32>
    %141 = vector.multi_reduction <add>, %140, %cst_56 [1] : vector<32x64xf32> to vector<32xf32>
    %142 = vector.shape_cast %141 : vector<32xf32> to vector<32x1xf32>
    %cst_57 = arith.constant 6.400000e+01 : f32
    %143 = vector.broadcast %cst_57 : f32 to vector<32x1xf32>
    %144 = arith.divf %142, %143 : vector<32x1xf32>
    %cst_58 = arith.constant 9.99999997E-7 : f32
    %145 = vector.broadcast %cst_58 : f32 to vector<32x1xf32>
    %146 = arith.addf %144, %145 : vector<32x1xf32>
    %147 = math.rsqrt %146 : vector<32x1xf32>
    %148 = vector.broadcast %147 : vector<32x1xf32> to vector<32x64xf32>
    %149 = arith.mulf %139, %148 : vector<32x64xf32>
    %150 = vector.broadcast %5 : vector<1x64xf32> to vector<32x64xf32>
    %151 = arith.mulf %149, %150 : vector<32x64xf32>
    %152 = vector.broadcast %6 : vector<1x64xf32> to vector<32x64xf32>
    %153 = arith.addf %151, %152 : vector<32x64xf32>
    %c0_59 = arith.constant 0 : index
    %c0_60 = arith.constant 0 : index
    %154 = vector.load %arg7[%c0_59, %c0_60] : memref<32x64xf32, #tpu.memory_space<vmem>>, vector<32x64xf32>
    tpu.vector_store %arg7[%c0_59, %c0_60], %153 {strides = array<i32>} : memref<32x64xf32, #tpu.memory_space<vmem>>, vector<32x64xf32>,
    return
  }
  func.func @transform_0(%arg0: i32) -> (i32, i32) {
    %c0_i32 = arith.constant 0 : i32
    %c0_i32_0 = arith.constant 0 : i32
    %c0_i32_1 = arith.constant 0 : i32
    return %c0_i32, %c0_i32_0 : i32, i32
  }
  func.func @transform_1(%arg0: i32) -> (i32, i32) {
    %c0_i32 = arith.constant 0 : i32
    %c0_i32_0 = arith.constant 0 : i32
    %c0_i32_1 = arith.constant 0 : i32
    return %c0_i32, %c0_i32_0 : i32, i32
  }
  func.func @transform_2(%arg0: i32) -> (i32, i32) {
    %c0_i32 = arith.constant 0 : i32
    %c0_i32_0 = arith.constant 0 : i32
    %c0_i32_1 = arith.constant 0 : i32
    return %c0_i32, %c0_i32_0 : i32, i32
  }
  func.func @transform_3(%arg0: i32) -> (i32, i32) {
    %c0_i32 = arith.constant 0 : i32
    %c0_i32_0 = arith.constant 0 : i32
    %c0_i32_1 = arith.constant 0 : i32
    return %c0_i32, %c0_i32_0 : i32, i32
  }
  func.func @transform_4(%arg0: i32) -> (i32, i32) {
    %c0_i32 = arith.constant 0 : i32
    %c0_i32_0 = arith.constant 0 : i32
    %c0_i32_1 = arith.constant 0 : i32
    return %c0_i32, %c0_i32_0 : i32, i32
  }
  func.func @transform_5(%arg0: i32) -> (i32, i32) {
    %c0_i32 = arith.constant 0 : i32
    %c0_i32_0 = arith.constant 0 : i32
    %c0_i32_1 = arith.constant 0 : i32
    return %c0_i32, %c0_i32_0 : i32, i32
  }
  func.func @transform_6(%arg0: i32) -> (i32, i32) {
    %c0_i32 = arith.constant 0 : i32
    %c0_i32_0 = arith.constant 0 : i32
    %c0_i32_1 = arith.constant 0 : i32
    return %c0_i32, %c0_i32_0 : i32, i32
  }
}

</mosaic_0001>

<bundles_post_ra>
// kernel: tpu_custom_call.1
= control target key start
LH: loop header
LB: loop body
LE: loop exit
PB: predicated region body
PF: predicated region fallthrough
CT: control target
= control target key end

     0   :  { %vm36_vm0 = vcmask 523264   ;;  %s2197_s0 = inlined_call_operand.vmem [shape: f32[32,64], index: 0, kind: input, shape index: {}]   ;;  %s2198_s1 = inlined_call_operand.vmem [shape: f32[64,192], index: 1, kind: input, shape index: {}]   ;;  %s2199_s2 = inlined_call_operand.vmem [shape: f32[64,128], index: 2, kind: input, shape index: {}]   ;;  %s2200_s3 = inlined_call_operand.vmem [shape: f32[192,64], index: 3, kind: input, shape index: {}]   ;;  %s2201_s4 = inlined_call_operand.vmem [shape: f32[8,64], index: 4, kind: input, shape index: {}]   ;;  %s2202_s5 = inlined_call_operand.vmem [shape: f32[2,192], index: 5, kind: input, shape index: {}]   ;;  %s2203_s6 = inlined_call_operand.hbm [shape: f32[32,64], index: 6, kind: output, shape index: {}]  }
   0x1   :  { %v24_v0 = vld [vmem:[%s2197_s0] sm:$0xff] }
   0x2   :  { %v37_v1 = vsel %vm36_vm0, %v24_v0, 0.0 }
   0x3   :  { %38 = vadd.xlane.f32.xlu0 %v37_v1 }
   0x4   :  { %11 = vsyncpa [#allocation3], 0  ;;  %v25_v2 = vld [vmem:[%s2197_s0 + $0x8] sm:$0xff]  ;;  %v1669_v4 = vmov 64.0   ;;  %v26_v5 = vld [vmem:[%s2197_s0 + $0x10] sm:$0xff]  ;;  %s1670_s16 = smov 64  }
   0x5   :  { %v40_v3 = vsel %vm36_vm0, %v25_v2, 0.0  ;;  %1553 = vrcp.f32 %v1669_v4  ;;  %v43_v7 = vsel %vm36_vm0, %v26_v5, 0.0  ;;  %v27_v9 = vld [vmem:[%s2197_s0 + $0x18] sm:$0xff]  ;;  %v156_v31 = vld [vmem:[%s2198_s1 + $0x70] sm:$0xff]  ;;  %v154_v34 = vld [vmem:[%s2198_s1 + $0x60] sm:$0xff]  ;;  %vm239_vm14 = vcmask 130048  }
   0x6   :  { %44 = vadd.xlane.f32.xlu2 %v43_v7  ;;  %v46_v10 = vsel %vm36_vm0, %v27_v9, 0.0  ;;  %v157_v32 = vld [vmem:[%s2198_s1 + $0x78] sm:$0xff]  ;;  %183 = vmatpush.msra.mxu0 %v156_v31  ;;  %v155_v35 = vld [vmem:[%s2198_s1 + $0x68] sm:$0xff]  ;;  %v152_v37 = vld [vmem:[%s2198_s1 + $0x50] sm:$0xff]  ;;  %s1671_s17 = smov 48   ;;  %s1672_s18 = smov 112  }
   0x7   :  { %212 = vmatpush.msra.mxu1 %v157_v32  ;;  %v153_v38 = vld [vmem:[%s2198_s1 + $0x58] sm:$0xff]  ;;  %v150_v40 = vld [vmem:[%s2198_s1 + $0x40] sm:$0xff]  ;;  %v151_v41 = vld [vmem:[%s2198_s1 + $0x48] sm:$0xff]  ;;  %s1673_s19 = smov 32   ;;  %s1674_s20 = smov 96  }
   0x8   :  { %184 = vmatpush.msra.mxu0 %v154_v34  ;;  %v148_v43 = vld [vmem:[%s2198_s1 + $0x30] sm:$0xff]  ;;  %v149_v44 = vld [vmem:[%s2198_s1 + $0x38] sm:$0xff]  ;;  %v146_v45 = vld [vmem:[%s2198_s1 + $0x20] sm:$0xff]  ;;  %s1675_s25 = smov 16   ;;  %s1676_s26 = smov 80  }
   0x9   :  { %213 = vmatpush.msra.mxu1 %v155_v35  ;;  %v147_v46 = vld [vmem:[%s2198_s1 + $0x28] sm:$0xff]  ;;  %v144_v47 = vld [vmem:[%s2198_s1 + $0x10] sm:$0xff]  ;;  %v145_v48 = vld [vmem:[%s2198_s1 + $0x18] sm:$0xff] }
   0xa   :  { %185 = vmatpush.msra.mxu0 %v152_v37  ;;  %v142_v49 = vld [vmem:[%s2198_s1] sm:$0xff]  ;;  %v143_v50 = vld [vmem:[%s2198_s1 + $0x8] sm:$0xff] }
   0xb   :  { %41 = vadd.xlane.f32.xlu0 %v40_v3  ;;  %v1554_v6 = vpop.eup %1553  ;;  %214 = vmatpush.msra.mxu1 %v153_v38  ;;  %v1546_v1 = vld [vmem:[%s2201_s4] ss:$0 sm:$0xff] }
   0xc   :  { %v50_v8 = vmul.f32 64.0, %v1554_v6  ;;  %vm54_vm1 = vweird.f32 %v1554_v6  ;;  %186 = vmatpush.msra.mxu0 %v150_v40 }
   0xd   :  { %215 = vmatpush.msra.mxu1 %v151_v41 }
   0xe   :  { %v51_v11 = vsub.f32 1.0, %v50_v8  ;;  %47 = vadd.xlane.f32.xlu2 %v46_v10  ;;  %187 = vmatpush.msra.mxu0 %v148_v43 }
   0xf   :  { %216 = vmatpush.msra.mxu1 %v149_v44 }
  0x10   :  { %v52_v12 = vmul.f32 %v1554_v6, %v51_v11  ;;  %188 = vmatpush.msra.mxu0 %v146_v45 }
  0x11   :  { %217 = vmatpush.msra.mxu1 %v147_v46 }
  0x12   :  { %v53_v13 = vadd.f32 %v1554_v6, %v52_v12  ;;  %189 = vmatpush.msra.mxu0 %v144_v47 }
  0x13   :  { %218 = vmatpush.msra.mxu1 %v145_v48 }
  0x14   :  { %v1731_v14 = vsel %vm54_vm1, %v1554_v6, %v53_v13  ;;  %190 = vmatpush.msra.mxu0 %v142_v49 }
  0x15   :  { %219 = vmatpush.msra.mxu1 %v143_v50 }
  0x76   :  { %v39_v15 = vpop.xlane.xlu0 %38 }
  0x77   :  { %v56_v16 = vmul.f32 %v1731_v14, %v39_v15 }
  0x79   :  { %v1734_v17 = vsub.f32 %v24_v0, %v56_v16  ;;  %v45_v25 = vpop.xlane.xlu2 %44 }
  0x7a   :  { %v58_v26 = vmul.f32 %v1731_v14, %v45_v25 }
  0x7b   :  { %v64_v18 = vmul.f32 %v1734_v17, %v1734_v17 }
  0x7c   :  { %v1746_v27 = vsub.f32 %v26_v5, %v58_v26  ;;  %v1547_v5 = vld [vmem:[%s2201_s4 + $0x1] ss:$0 sm:$0xff] }
  0x7d   :  { %v68_v19 = vsel %vm36_vm0, %v64_v18, 0.0 }
  0x7e   :  { %69 = vadd.xlane.f32.xlu1 %v68_v19  ;;  %v42_v20 = vpop.xlane.xlu0 %41  ;;  %v66_v28 = vmul.f32 %v1746_v27, %v1746_v27 }
  0x7f   :  { %v57_v21 = vmul.f32 %v1731_v14, %v42_v20 }
  0x80   :  { %v74_v29 = vsel %vm36_vm0, %v66_v28, 0.0 }
  0x81   :  { %v1740_v22 = vsub.f32 %v25_v2, %v57_v21  ;;  %75 = vadd.xlane.f32.xlu2 %v74_v29  ;;  %v48_v30 = vpop.xlane.xlu2 %47 }
  0x82   :  { %v59_v33 = vmul.f32 %v1731_v14, %v48_v30 }
  0x83   :  { %v65_v23 = vmul.f32 %v1740_v22, %v1740_v22 }
  0x84   :  { %v1764_v36 = vsub.f32 %v27_v9, %v59_v33 }
  0x85   :  { %v71_v24 = vsel %vm36_vm0, %v65_v23, 0.0 }
  0x86   :  { %72 = vadd.xlane.f32.xlu1 %v71_v24  ;;  %v67_v39 = vmul.f32 %v1764_v36, %v1764_v36 }
  0x88   :  { %v77_v42 = vsel %vm36_vm0, %v67_v39, 0.0 }
  0x89   :  { %78 = vadd.xlane.f32.xlu2 %v77_v42 }
  0xf1   :  { %v70_v51 = vpop.xlane.xlu1 %69 }
  0xf2   :  { %v80_v52 = vmul.f32 %v70_v51, %v1731_v14 }
  0xf4   :  { %v84_v53 = vadd.f32 1e-06, %v80_v52  ;;  %v76_v16 = vpop.xlane.xlu2 %75 }
  0xf6   :  { %1555 = vrsqrt.f32 %v84_v53  ;;  %vm94_vm3 = vweird.f32 %v84_v53 }
  0xf9   :  { %v73_v54 = vpop.xlane.xlu1 %72 }
  0xfa   :  { %v81_v55 = vmul.f32 %v73_v54, %v1731_v14 }
  0xfc   :  { %v1556_v56 = vpop.eup %1555  ;;  %v85_v57 = vadd.f32 1e-06, %v81_v55  ;;  %v79_v19 = vpop.xlane.xlu2 %78 }
  0xfd   :  { %v89_v58 = vmul.f32 %v1556_v56, %v84_v53  ;;  %vm95_vm2 = vweird.f32 %v1556_v56  ;;  %v83_v20 = vmul.f32 %v79_v19, %v1731_v14 }
  0xfe   :  { %1557 = vrsqrt.f32 %v85_v57  ;;  %vm96_vm4 = vmor %vm94_vm3, %vm95_vm2  ;;  %vm104_vm6 = vweird.f32 %v85_v57 }
  0xff   :  { %v90_v59 = vmul.f32 %v1556_v56, %v89_v58  ;;  %v87_v24 = vadd.f32 1e-06, %v83_v20 }
 0x101   :  { %v91_v60 = vmul.f32 0.5, %v90_v59  ;;  %vm124_vm11 = vweird.f32 %v87_v24 }
 0x103   :  { %v92_v61 = vsub.f32 1.5, %v91_v60 }
 0x104   :  { %v1558_v62 = vpop.eup %1557 }
 0x105   :  { %v93_v63 = vmul.f32 %v1556_v56, %v92_v61  ;;  %v99_v0 = vmul.f32 %v1558_v62, %v85_v57  ;;  %vm105_vm5 = vweird.f32 %v1558_v62 }
 0x106   :  { %vm106_vm7 = vmor %vm104_vm6, %vm105_vm5 }
 0x107   :  { %v97_v2 = vsel %vm96_vm4, %v1556_v56, %v93_v63  ;;  %v100_v3 = vmul.f32 %v1558_v62, %v99_v0 }
 0x108   :  { %v128_v4 = vmul.f32 %v97_v2, %v1734_v17  ;;  %v82_v17 = vmul.f32 %v76_v16, %v1731_v14 }
 0x109   :  { %v101_v6 = vmul.f32 0.5, %v100_v3 }
 0x10a   :  { %v133_v7 = vmul.f32 %v1546_v1, %v128_v4  ;;  %v86_v18 = vadd.f32 1e-06, %v82_v17 }
 0x10b   :  { %v102_v8 = vsub.f32 1.5, %v101_v6 }
 0x10c   :  { %v138_v9 = vadd.f32 %v1547_v5, %v133_v7  ;;  %1559 = vrsqrt.f32 %v86_v18  ;;  %vm114_vm8 = vweird.f32 %v86_v18 }
 0x10d   :  { %v103_v10 = vmul.f32 %v1558_v62, %v102_v8  ;;  %1561 = vrsqrt.f32 %v87_v24 }
 0x10e   :  { %1427 = vmatmul.msk.f32.vlgmr.msra.gmra.mxu0 %vm36_vm0, %v138_v9  ;;  %1431 = vmatmul.msk.f32.vlgmr.msra.gmra.mxu1 %vm36_vm0, %v138_v9 }
 0x10f   :  { %v107_v11 = vsel %vm106_vm7, %v1558_v62, %v103_v10 }
 0x110   :  { %v129_v12 = vmul.f32 %v107_v11, %v1740_v22 }
 0x112   :  { %v134_v13 = vmul.f32 %v1546_v1, %v129_v12  ;;  %v1560_v21 = vpop.eup %1559 }
 0x113   :  { %v109_v23 = vmul.f32 %v1560_v21, %v86_v18  ;;  %vm115_vm9 = vweird.f32 %v1560_v21  ;;  %v1562_v28 = vpop.eup %1561 }
 0x114   :  { %v139_v15 = vadd.f32 %v1547_v5, %v134_v13  ;;  %vm116_vm10 = vmor %vm114_vm8, %vm115_vm9  ;;  %v119_v30 = vmul.f32 %v1562_v28, %v87_v24  ;;  %vm125_vm12 = vweird.f32 %v1562_v28 }
 0x115   :  { %v110_v25 = vmul.f32 %v1560_v21, %v109_v23  ;;  %vm126_vm13 = vmor %vm124_vm11, %vm125_vm12 }
 0x116   :  { %1428 = vmatmul.msk.f32.gmra.mxu0 %vm36_vm0, %v139_v15  ;;  %1432 = vmatmul.msk.f32.gmra.mxu1 %vm36_vm0, %v139_v15  ;;  %v120_v32 = vmul.f32 %v1562_v28, %v119_v30 }
 0x117   :  { %v111_v22 = vmul.f32 0.5, %v110_v25 }
 0x118   :  { %v121_v34 = vmul.f32 0.5, %v120_v32 }
 0x119   :  { %v112_v26 = vsub.f32 1.5, %v111_v22 }
 0x11a   :  { %v122_v37 = vsub.f32 1.5, %v121_v34 }
 0x11b   :  { %v113_v29 = vmul.f32 %v1560_v21, %v112_v26 }
 0x11c   :  { %v123_v39 = vmul.f32 %v1562_v28, %v122_v37 }
 0x11d   :  { %v117_v31 = vsel %vm116_vm10, %v1560_v21, %v113_v29 }
 0x11e   :  { %v130_v33 = vmul.f32 %v117_v31, %v1746_v27  ;;  %v127_v40 = vsel %vm126_vm13, %v1562_v28, %v123_v39  ;;  %v34_v27 = vld [vmem:[%s2202_s5] ss:$2 sm:$0x3] }
 0x11f   :  { %v131_v41 = vmul.f32 %v127_v40, %v1764_v36  ;;  %v159_v44 = vperm.slane %v34_v27, 0  ;;  %v160_v48 = vperm.slane %v34_v27, 1 }
 0x120   :  { %v135_v35 = vmul.f32 %v1546_v1, %v130_v33 }
 0x121   :  { %v136_v42 = vmul.f32 %v1546_v1, %v131_v41 }
 0x122   :  { %v140_v38 = vadd.f32 %v1547_v5, %v135_v35 }
 0x123   :  { %v141_v43 = vadd.f32 %v1547_v5, %v136_v42 }
 0x124   :  { %1433 = vmatmul.msk.f32.gmra.mxu1 %vm36_vm0, %v140_v38  ;;  %1429 = vmatmul.msk.f32.gmra.mxu0 %vm36_vm0, %v140_v38 }
 0x12c   :  { %1434 = vmatmul.msk.f32.gmra.mxu1 %vm36_vm0, %v141_v43  ;;  %1430 = vmatmul.msk.f32.gmra.mxu0 %vm36_vm0, %v141_v43 }
 0x18b   :  { %v192_v45 = vpop.f32.mrf.mxu0  ;;  %v221_v46 = vpop.f32.mrf.mxu1 }
 0x18c   :  { %v1830_v47 = vadd.f32 %v192_v45, %v159_v44  ;;  %v222_v50 = vadd.f32 %v221_v46, %v160_v48 }
 0x18e   :  { %235 = vrot.lane.b32.xlu1 %v1830_v47, %s1670_s16 }
 0x193   :  { %v195_v36 = vpop.f32.mrf.mxu0  ;;  %v224_v49 = vpop.f32.mrf.mxu1 }
 0x194   :  { %v1833_v51 = vadd.f32 %v195_v36, %v159_v44  ;;  %v225_v52 = vadd.f32 %v224_v49, %v160_v48 }
 0x196   :  { %372 = vmatpush.msra.mxu2 %v225_v52  ;;  %237 = vrot.lane.b32.xlu0 %v1833_v51, %s1670_s16  ;;  %v1836_v53 = vpack.i.bf16 %v222_v50, %v225_v52 }
 0x198   :  { %373 = vmatpush.msra.mxu2 %v222_v50 }
 0x1a1   :  { %v198_v54 = vpop.f32.mrf.mxu0  ;;  %v227_v0 = vpop.f32.mrf.mxu1 }
 0x1a2   :  { %v1838_v55 = vadd.f32 %v198_v54, %v159_v44  ;;  %v1862_v13 = vadd.f32 %v227_v0, %v160_v48 }
 0x1a4   :  { %273 = vrot.lane.b32.xlu1 %v1838_v55, %s1670_s16 }
 0x1a9   :  { %v201_v62 = vpop.f32.mrf.mxu0  ;;  %v230_v6 = vpop.f32.mrf.mxu1 }
 0x1aa   :  { %v1849_v63 = vadd.f32 %v201_v62, %v159_v44  ;;  %v1857_v10 = vadd.f32 %v230_v6, %v160_v48 }
 0x200   :  { %v236_v57 = vpop.permute.xlu1 %235 }
 0x208   :  { %v238_v56 = vpop.permute.xlu0 %237 }
 0x209   :  { %1435 = vmatpush.xpose.msk.msra.mxu3 %vm239_vm14, %v238_v56 }
 0x20d   :  { %1436 = vmatpush.xpose.msk.msra.mxu3 %vm239_vm14, %v236_v57 }
 0x210   :  { %1437 = vmatmul.msk.f32.vlgmr.msra.gmra.mxu3 %vm239_vm14, %v1830_v47 }
 0x216   :  { %v274_v11 = vpop.permute.xlu1 %273 }
 0x218   :  { %1438 = vmatmul.msk.f32.gmra.mxu3 %vm239_vm14, %v1833_v51 }
 0x293   :  { %v265_v58 = vpop.f32.mrf.mxu3 }
 0x294   :  { %v308_v59 = vsel %vm239_vm14, %v265_v58, -inf }
 0x295   :  { %309 = vmax.xlane.f32.xlu2 %v308_v59  ;;  %v410_v59 = vld [vmem:[%s2200_s3] sm:$0xff] }
 0x29b   :  { %v268_v60 = vpop.f32.mrf.mxu3 }
 0x29c   :  { %v311_v61 = vsel %vm239_vm14, %v268_v60, -inf }
 0x29d   :  { %312 = vmax.xlane.f32.xlu0 %v311_v61 }
 0x2ad   :  { %275 = vrot.lane.b32.xlu2 %v1849_v63, %s1670_s16 }
 0x2b1   :  { %418 = vrot.lane.b32.xlu0 %v1833_v51, %s1671_s17 }
 0x2b9   :  { %412 = vrot.lane.b32.xlu0 %v1830_v47, %s1672_s18 }
 0x308   :  { %v310_v1 = vpop.xlane.xlu2 %309 }
 0x309   :  { %v320_v2 = vsub.f32 %v265_v58, %v310_v1  ;;  %v411_v58 = vld [vmem:[%s2200_s3 + $0x8] sm:$0xff] }
 0x30b   :  { %v324_v3 = vmul.f32 1.442695, %v320_v2 }
 0x30d   :  { %1563 = vpow2.f32 %v324_v3 }
 0x310   :  { %v276_v4 = vpop.permute.xlu2 %275  ;;  %v313_v5 = vpop.xlane.xlu0 %312 }
 0x311   :  { %v321_v7 = vsub.f32 %v268_v60, %v313_v5  ;;  %1439 = vmatpush.xpose.msk.msrb.mxu3 %vm239_vm14, %v276_v4 }
 0x313   :  { %v1564_v8 = vpop.eup %1563  ;;  %v326_v9 = vmul.f32 1.442695, %v321_v7 }
 0x314   :  { %v332_v12 = vsel %vm239_vm14, %v1564_v8, 0.0 }
 0x315   :  { %1565 = vpow2.f32 %v326_v9  ;;  %333 = vadd.xlane.f32.xlu1 %v332_v12  ;;  %1440 = vmatpush.xpose.msk.msrb.mxu3 %vm239_vm14, %v274_v11 }
 0x318   :  { %1441 = vmatmul.msk.f32.vlgmr.msrb.gmra.mxu3 %vm239_vm14, %v1838_v55 }
 0x319   :  { %401 = vmatpush.msra.mxu3 %v1857_v10 }
 0x31b   :  { %402 = vmatpush.msra.mxu3 %v1862_v13  ;;  %v1566_v15 = vpop.eup %1565 }
 0x31c   :  { %v335_v16 = vsel %vm239_vm14, %v1566_v15, 0.0 }
 0x31d   :  { %336 = vadd.xlane.f32.xlu2 %v335_v16 }
 0x320   :  { %1442 = vmatmul.msk.f32.gmra.mxu3 %vm239_vm14, %v1849_v63 }
 0x323   :  { %v419_v17 = vpop.permute.xlu0 %418 }
 0x324   :  { %1447 = vmatpush.xpose.msk.msrb.mxu2 %vm239_vm14, %v419_v17 }
 0x32b   :  { %v413_v28 = vpop.permute.xlu0 %412 }
 0x32e   :  { %416 = vrot.lane.b32.xlu1 %v1830_v47, %s1671_s17 }
 0x388   :  { %v334_v18 = vpop.xlane.xlu1 %333 }
 0x389   :  { %1567 = vrcp.f32 %v334_v18 }
 0x38f   :  { %v1568_v19 = vpop.eup %1567 }
 0x390   :  { %v337_v20 = vpop.xlane.xlu2 %336  ;;  %v348_v21 = vmul.f32 %v1568_v19, %v1564_v8 }
 0x391   :  { %1569 = vrcp.f32 %v337_v20 }
 0x392   :  { %1443 = vmatmul.msk.f32.vlgmr.msra.gmra.mxu2 %vm239_vm14, %v348_v21 }
 0x397   :  { %v1570_v23 = vpop.eup %1569 }
 0x398   :  { %v349_v24 = vmul.f32 %v1570_v23, %v1566_v15  ;;  %v1933_v23 = vpack.i.bf16 %v1862_v13, %v1857_v10 }
 0x39a   :  { %1444 = vmatmul.msk.f32.gmra.mxu2 %vm239_vm14, %v349_v24 }
 0x39b   :  { %v302_v25 = vpop.f32.mrf.mxu3 }
 0x39c   :  { %v314_v22 = vsel %vm239_vm14, %v302_v25, -inf }
 0x39d   :  { %315 = vmax.xlane.f32.xlu2 %v314_v22 }
 0x3a0   :  { %v417_v26 = vpop.permute.xlu1 %416 }
 0x3a1   :  { %1448 = vmatpush.xpose.msk.msrb.mxu2 %vm239_vm14, %v417_v26 }
 0x3a3   :  { %v305_v29 = vpop.f32.mrf.mxu3 }
 0x3a4   :  { %1449 = vmatmul.msk.f32.vlgmr.msrb.gmra.mxu2 %vm239_vm14, %v413_v28  ;;  %v317_v30 = vsel %vm239_vm14, %v305_v29, -inf }
 0x3a5   :  { %318 = vmax.xlane.f32.xlu0 %v317_v30 }
 0x3b5   :  { %457 = vrot.lane.b32.xlu2 %v1849_v63, %s1671_s17 }
 0x3b9   :  { %455 = vrot.lane.b32.xlu0 %v1838_v55, %s1671_s17 }
 0x3c1   :  { %1517 = vrot.lane.b32.xlu0 %v1836_v53, %s1672_s18 }
 0x3c9   :  { %698 = vrot.lane.b32.xlu0 %v1833_v51, %s1673_s19 }
 0x3d1   :  { %692 = vrot.lane.b32.xlu0 %v1830_v47, %s1674_s20 }
 0x410   :  { %v316_v31 = vpop.xlane.xlu2 %315 }
 0x411   :  { %v322_v32 = vsub.f32 %v302_v25, %v316_v31 }
 0x413   :  { %v328_v33 = vmul.f32 1.442695, %v322_v32 }
 0x415   :  { %1571 = vpow2.f32 %v328_v33  ;;  %v375_v34 = vpop.f32.mrf.mxu2 }
 0x418   :  { %v458_v35 = vpop.permute.xlu2 %457  ;;  %v319_v37 = vpop.xlane.xlu0 %318 }
 0x419   :  { %v323_v38 = vsub.f32 %v305_v29, %v319_v37  ;;  %1451 = vmatpush.xpose.msk.msrb.mxu3 %vm239_vm14, %v458_v35 }
 0x41b   :  { %v1572_v39 = vpop.eup %1571  ;;  %v330_v40 = vmul.f32 1.442695, %v323_v38 }
 0x41c   :  { %v338_v41 = vsel %vm239_vm14, %v1572_v39, 0.0 }
 0x41d   :  { %1573 = vpow2.f32 %v330_v40  ;;  %339 = vadd.xlane.f32.xlu1 %v338_v41  ;;  %v378_v42 = vpop.f32.mrf.mxu2 }
 0x423   :  { %v1574_v43 = vpop.eup %1573 }
 0x424   :  { %v341_v27 = vsel %vm239_vm14, %v1574_v43, 0.0 }
 0x425   :  { %342 = vadd.xlane.f32.xlu2 %v341_v27 }
 0x427   :  { %v445_v44 = vpop.f32.mrf.mxu2 }
 0x428   :  { %v490_v46 = vsel %vm239_vm14, %v445_v44, -inf }
 0x42b   :  { %v456_v45 = vpop.permute.xlu0 %455 }
 0x42c   :  { %1452 = vmatpush.xpose.msk.msrb.mxu3 %vm239_vm14, %v456_v45 }
 0x42d   :  { %491 = vmax.xlane.f32.xlu2 %v490_v46 }
 0x433   :  { %v1518_v48 = vpop.permute.xlu0 %1517 }
 0x434   :  { %v1519_v36 = vunpack.i.l.bf16 %v1518_v48  ;;  %v1520_v49 = vunpack.i.h.bf16 %v1518_v48 }
 0x436   :  { %453 = vrot.lane.b32.xlu1 %v1849_v63, %s1672_s18  ;;  %562 = vmatpush.msrb.mxu0 %v1519_v36 }
 0x437   :  { %1503 = vmatpush.msra.mxu2 %v1519_v36 }
 0x438   :  { %563 = vmatpush.msrb.mxu0 %v1520_v49 }
 0x439   :  { %1504 = vmatpush.msra.mxu2 %v1520_v49 }
 0x43b   :  { %v699_v50 = vpop.permute.xlu0 %698 }
 0x43c   :  { %1467 = vmatpush.xpose.msk.msra.mxu0 %vm239_vm14, %v699_v50 }
 0x43e   :  { %696 = vrot.lane.b32.xlu1 %v1830_v47, %s1673_s19 }
 0x443   :  { %v693_v18 = vpop.permute.xlu0 %692 }
 0x445   :  { %451 = vrot.lane.b32.xlu2 %v1838_v55, %s1672_s18 }
 0x446   :  { %694 = vrot.lane.b32.xlu1 %v1833_v51, %s1674_s20 }
 0x490   :  { %v340_v52 = vpop.xlane.xlu1 %339 }
 0x491   :  { %1575 = vrcp.f32 %v340_v52 }
 0x497   :  { %v1576_v54 = vpop.eup %1575 }
 0x498   :  { %v350_v56 = vmul.f32 %v1576_v54, %v1572_v39  ;;  %v343_v57 = vpop.xlane.xlu2 %342 }
 0x499   :  { %1577 = vrcp.f32 %v343_v57 }
 0x49a   :  { %1445 = vmatmul.msk.f32.vlgmr.msra.gmra.mxu3 %vm239_vm14, %v350_v56 }
 0x49b   :  { %677 = vmatpush.msra.mxu3 %v411_v58 }
 0x49d   :  { %678 = vmatpush.msra.mxu3 %v410_v59 }
 0x49f   :  { %v1578_v60 = vpop.eup %1577 }
 0x4a0   :  { %v492_v61 = vpop.xlane.xlu2 %491  ;;  %v351_v62 = vmul.f32 %v1578_v60, %v1574_v43 }
 0x4a1   :  { %v502_v0 = vsub.f32 %v445_v44, %v492_v61 }
 0x4a2   :  { %1446 = vmatmul.msk.f32.gmra.mxu3 %vm239_vm14, %v351_v62 }
 0x4a3   :  { %v506_v1 = vmul.f32 1.442695, %v502_v0 }
 0x4a5   :  { %1579 = vpow2.f32 %v506_v1 }
 0x4a8   :  { %v452_v2 = vpop.permute.xlu2 %451  ;;  %v454_v3 = vpop.permute.xlu1 %453 }
 0x4aa   :  { %1453 = vmatmul.msk.f32.vlgmr.msrb.gmra.mxu3 %vm239_vm14, %v452_v2 }
 0x4ab   :  { %v1580_v4 = vpop.eup %1579 }
 0x4ac   :  { %v514_v5 = vsel %vm239_vm14, %v1580_v4, 0.0 }
 0x4ad   :  { %515 = vadd.xlane.f32.xlu2 %v514_v5 }
 0x4b0   :  { %v697_v6 = vpop.permute.xlu1 %696 }
 0x4b1   :  { %1468 = vmatpush.xpose.msk.msra.mxu0 %vm239_vm14, %v697_v6 }
 0x4b2   :  { %1454 = vmatmul.msk.f32.gmra.mxu3 %vm239_vm14, %v454_v3 }
 0x4b8   :  { %v695_v21 = vpop.permute.xlu1 %694 }
 0x4ba   :  { %1463 = vmatmul.msk.f32.vlgmr.msra.gmra.mxu3 %vm239_vm14, %v375_v34 }
 0x4c2   :  { %1464 = vmatmul.msk.f32.gmra.mxu3 %vm239_vm14, %v378_v42 }
 0x4c5   :  { %414 = vrot.lane.b32.xlu2 %v1833_v51, %s1672_s18 }
 0x4cd   :  { %737 = vrot.lane.b32.xlu2 %v1849_v63, %s1673_s19 }
 0x51d   :  { %v404_v7 = vpop.f32.mrf.mxu3 }
 0x51e   :  { %1465 = vmatmul.msk.f32.gmra.mxu3 %vm239_vm14, %v404_v7 }
 0x520   :  { %v516_v8 = vpop.xlane.xlu2 %515 }
 0x521   :  { %1581 = vrcp.f32 %v516_v8 }
 0x525   :  { %v407_v9 = vpop.f32.mrf.mxu3 }
 0x526   :  { %1466 = vmatmul.msk.f32.gmra.mxu3 %vm239_vm14, %v407_v9 }
 0x527   :  { %v1582_v11 = vpop.eup %1581 }
 0x528   :  { %v415_v12 = vpop.permute.xlu2 %414  ;;  %v530_v15 = vmul.f32 %v1582_v11, %v1580_v4 }
 0x529   :  { %1450 = vmatmul.msk.f32.gmra.mxu2 %vm239_vm14, %v415_v12 }
 0x52a   :  { %1455 = vmatmul.msk.f32.vlgmr.msrb.gmra.mxu0 %vm239_vm14, %v530_v15 }
 0x52d   :  { %v484_v16 = vpop.f32.mrf.mxu3 }
 0x52e   :  { %v496_v17 = vsel %vm239_vm14, %v484_v16, -inf }
 0x52f   :  { %497 = vmax.xlane.f32.xlu0 %v496_v17 }
 0x530   :  { %v738_v41 = vpop.permute.xlu2 %737 }
 0x532   :  { %1469 = vmatmul.msk.f32.vlgmr.msra.gmra.mxu0 %vm239_vm14, %v693_v18 }
 0x535   :  { %v487_v19 = vpop.f32.mrf.mxu3 }
 0x536   :  { %v499_v20 = vsel %vm239_vm14, %v487_v19, -inf }
 0x537   :  { %500 = vmax.xlane.f32.xlu1 %v499_v20 }
 0x53a   :  { %1470 = vmatmul.msk.f32.gmra.mxu0 %vm239_vm14, %v695_v21 }
 0x53d   :  { %v1980_v15 = vpop.f32.mrf.mxu3 }
 0x543   :  { %735 = vrot.lane.b32.xlu0 %v1838_v55, %s1673_s19  ;;  %s1678_s19 = smov 128  }
 0x550   :  { %1522 = vrot.lane.b32.xlu1 %v1933_v23, %s1672_s18  ;;  %s1415_s18 = sshll.u32 %s2203_s6, 4  ;;  %s1416_s18 = int_to_ptr.hbm [resolvable:$true] %s1415_s18 }
 0x558   :  { %937 = vrot.lane.b32.xlu1 %v1833_v51, %s1675_s25 }
 0x560   :  { %935 = vrot.lane.b32.xlu1 %v1830_v47, %s1675_s25 }
 0x5a2   :  { %v498_v24 = vpop.xlane.xlu0 %497 }
 0x5a3   :  { %v504_v25 = vsub.f32 %v484_v16, %v498_v24 }
 0x5a5   :  { %v510_v22 = vmul.f32 1.442695, %v504_v25 }
 0x5a7   :  { %1583 = vpow2.f32 %v510_v22  ;;  %v1941_v26 = vpop.f32.mrf.mxu0 }
 0x5aa   :  { %v501_v28 = vpop.xlane.xlu1 %500 }
 0x5ab   :  { %v505_v29 = vsub.f32 %v487_v19, %v501_v28  ;;  %v1988_v19 = vpop.f32.mrf.mxu3 }
 0x5ac   :  { %v448_v4 = vpop.f32.mrf.mxu2 }
 0x5ad   :  { %v1584_v10 = vpop.eup %1583  ;;  %v512_v13 = vmul.f32 1.442695, %v505_v29  ;;  %v493_v5 = vsel %vm239_vm14, %v448_v4, -inf }
 0x5ae   :  { %v520_v30 = vsel %vm239_vm14, %v1584_v10, 0.0 }
 0x5af   :  { %1585 = vpow2.f32 %v512_v13  ;;  %521 = vadd.xlane.f32.xlu0 %v520_v30  ;;  %v725_v31 = vpop.f32.mrf.mxu0 }
 0x5b0   :  { %v770_v32 = vsel %vm239_vm14, %v725_v31, -inf }
 0x5b1   :  { %771 = vmax.xlane.f32.xlu2 %v770_v32 }
 0x5b3   :  { %v1992_v25 = vpop.f32.mrf.mxu3 }
 0x5b5   :  { %v1586_v33 = vpop.eup %1585  ;;  %v736_v43 = vpop.permute.xlu0 %735 }
 0x5b6   :  { %v523_v34 = vsel %vm239_vm14, %v1586_v33, 0.0 }
 0x5b7   :  { %v728_v35 = vpop.f32.mrf.mxu0  ;;  %524 = vadd.xlane.f32.xlu0 %v523_v34 }
 0x5b8   :  { %v773_v37 = vsel %vm239_vm14, %v728_v35, -inf }
 0x5b9   :  { %774 = vmax.xlane.f32.xlu2 %v773_v37 }
 0x5c2   :  { %v1523_v38 = vpop.permute.xlu1 %1522 }
 0x5c3   :  { %v1524_v39 = vunpack.i.l.bf16 %v1523_v38  ;;  %v1525_v40 = vunpack.i.h.bf16 %v1523_v38 }
 0x5c5   :  { %599 = vmatpush.msrb.mxu1 %v1524_v39 }
 0x5c7   :  { %600 = vmatpush.msrb.mxu1 %v1525_v40 }
 0x5c9   :  { %1471 = vmatpush.xpose.msk.msra.mxu1 %vm239_vm14, %v738_v41 }
 0x5ca   :  { %v938_v42 = vpop.permute.xlu1 %937 }
 0x5cb   :  { %1527 = vrot.lane.b32.xlu0 %v1836_v53, %s1674_s20  ;;  %1483 = vmatpush.xpose.msk.msrb.mxu3 %vm239_vm14, %v938_v42 }
 0x5cd   :  { %1472 = vmatpush.xpose.msk.msra.mxu1 %vm239_vm14, %v736_v43 }
 0x5d1   :  { %731 = vrot.lane.b32.xlu2 %v1838_v55, %s1674_s20 }
 0x5d2   :  { %v936_v27 = vpop.permute.xlu1 %935 }
 0x5d3   :  { %733 = vrot.lane.b32.xlu0 %v1849_v63, %s1674_s20  ;;  %1484 = vmatpush.xpose.msk.msrb.mxu3 %vm239_vm14, %v936_v27 }
 0x5db   :  { %931 = vrot.lane.b32.xlu0 %v1830_v47, %s1676_s26 }
 0x5e3   :  { %933 = vrot.lane.b32.xlu0 %v1833_v51, %s1676_s26 }
 0x5eb   :  { %974 = vrot.lane.b32.xlu0 %v1838_v55, %s1675_s25 }
 0x5f3   :  { %970 = vrot.lane.b32.xlu0 %v1838_v55, %s1676_s26 }
 0x5fb   :  { %972 = vrot.lane.b32.xlu0 %v1849_v63, %s1676_s26 }
 0x622   :  { %v522_v44 = vpop.xlane.xlu0 %521 }
 0x623   :  { %1587 = vrcp.f32 %v522_v44 }
 0x624   :  { %v772_v45 = vpop.xlane.xlu2 %771 }
 0x625   :  { %v782_v46 = vsub.f32 %v725_v31, %v772_v45 }
 0x627   :  { %v786_v48 = vmul.f32 1.442695, %v782_v46 }
 0x629   :  { %v1588_v36 = vpop.eup %1587  ;;  %1589 = vpow2.f32 %v786_v48 }
 0x62a   :  { %v525_v47 = vpop.xlane.xlu0 %524  ;;  %v532_v49 = vmul.f32 %v1588_v36, %v1584_v10  ;;  %v1996_v10 = vpop.f32.mrf.mxu3 }
 0x62b   :  { %1591 = vrcp.f32 %v525_v47 }
 0x62c   :  { %v775_v51 = vpop.xlane.xlu2 %774  ;;  %1457 = vmatmul.msk.f32.vlgmr.msrb.gmra.mxu1 %vm239_vm14, %v532_v49 }
 0x62d   :  { %v783_v50 = vsub.f32 %v728_v35, %v775_v51 }
 0x62f   :  { %v1590_v52 = vpop.eup %1589  ;;  %v788_v54 = vmul.f32 1.442695, %v783_v50 }
 0x630   :  { %v794_v55 = vsel %vm239_vm14, %v1590_v52, 0.0 }
 0x631   :  { %v1592_v56 = vpop.eup %1591  ;;  %1593 = vpow2.f32 %v788_v54  ;;  %795 = vadd.xlane.f32.xlu2 %v794_v55 }
 0x632   :  { %v533_v57 = vmul.f32 %v1592_v56, %v1586_v33 }
 0x634   :  { %1458 = vmatmul.msk.f32.gmra.mxu1 %vm239_vm14, %v533_v57  ;;  %v732_v60 = vpop.permute.xlu2 %731  ;;  %v609_v57 = vld [vmem:[%s2200_s3 + $0x18] sm:$0xff] }
 0x635   :  { %636 = vmatpush.msrb.mxu2 %v609_v57  ;;  %v1182_v57 = vld [vmem:[%s2199_s2 + $0x38] sm:$0xff] }
 0x637   :  { %v1594_v58 = vpop.eup %1593 }
 0x638   :  { %v797_v59 = vsel %vm239_vm14, %v1594_v58, 0.0 }
 0x639   :  { %798 = vadd.xlane.f32.xlu1 %v797_v59 }
 0x63c   :  { %1473 = vmatmul.msk.f32.vlgmr.msra.gmra.mxu1 %vm239_vm14, %v732_v60 }
 0x63d   :  { %v1528_v61 = vpop.permute.xlu0 %1527 }
 0x63e   :  { %v1529_v62 = vunpack.i.l.bf16 %v1528_v61  ;;  %v1530_v0 = vunpack.i.h.bf16 %v1528_v61 }
 0x640   :  { %840 = vmatpush.msrb.mxu0 %v1529_v62 }
 0x642   :  { %841 = vmatpush.msrb.mxu0 %v1530_v0 }
 0x645   :  { %v734_v1 = vpop.permute.xlu0 %733 }
 0x646   :  { %1474 = vmatmul.msk.f32.gmra.mxu1 %vm239_vm14, %v734_v1 }
 0x649   :  { %976 = vrot.lane.b32.xlu2 %v1849_v63, %s1675_s25 }
 0x64d   :  { %v932_v2 = vpop.permute.xlu0 %931 }
 0x64e   :  { %1485 = vmatmul.msk.f32.vlgmr.msrb.gmra.mxu3 %vm239_vm14, %v932_v2 }
 0x655   :  { %v934_v3 = vpop.permute.xlu0 %933 }
 0x656   :  { %1486 = vmatmul.msk.f32.gmra.mxu3 %vm239_vm14, %v934_v3 }
 0x65d   :  { %v975_v63 = vpop.permute.xlu0 %974 }
 0x665   :  { %v971_v24 = vpop.permute.xlu0 %970 }
 0x66d   :  { %v973_v29 = vpop.permute.xlu0 %972 }
 0x672   :  { %494 = vmax.xlane.f32.xlu2 %v493_v5 }
 0x6a4   :  { %v796_v6 = vpop.xlane.xlu2 %795 }
 0x6a5   :  { %1595 = vrcp.f32 %v796_v6 }
 0x6a9   :  { %v1978_v7 = vpop.f32.mrf.mxu1 }
 0x6ab   :  { %v1596_v8 = vpop.eup %1595 }
 0x6ac   :  { %v810_v9 = vmul.f32 %v1596_v8, %v1590_v52  ;;  %v977_v11 = vpop.permute.xlu2 %976  ;;  %v799_v12 = vpop.xlane.xlu1 %798 }
 0x6ad   :  { %1597 = vrcp.f32 %v799_v12  ;;  %1487 = vmatpush.xpose.msk.msra.mxu0 %vm239_vm14, %v977_v11 }
 0x6ae   :  { %1475 = vmatmul.msk.f32.vlgmr.msrb.gmra.mxu0 %vm239_vm14, %v810_v9 }
 0x6b1   :  { %v1984_v16 = vpop.f32.mrf.mxu1  ;;  %1488 = vmatpush.xpose.msk.msra.mxu0 %vm239_vm14, %v975_v63 }
 0x6b3   :  { %v1598_v17 = vpop.eup %1597 }
 0x6b4   :  { %v811_v18 = vmul.f32 %v1598_v17, %v1594_v58  ;;  %v608_v58 = vld [vmem:[%s2200_s3 + $0x10] sm:$0xff] }
 0x6b5   :  { %637 = vmatpush.msrb.mxu2 %v608_v58  ;;  %v1181_v58 = vld [vmem:[%s2199_s2 + $0x30] sm:$0xff] }
 0x6b6   :  { %1476 = vmatmul.msk.f32.gmra.mxu0 %vm239_vm14, %v811_v18 }
 0x6b9   :  { %v764_v20 = vpop.f32.mrf.mxu1 }
 0x6ba   :  { %v776_v21 = vsel %vm239_vm14, %v764_v20, -inf }
 0x6bb   :  { %777 = vmax.xlane.f32.xlu1 %v776_v21 }
 0x6be   :  { %1489 = vmatmul.msk.f32.vlgmr.msra.gmra.mxu0 %vm239_vm14, %v971_v24 }
 0x6c3   :  { %v767_v22 = vpop.f32.mrf.mxu1 }
 0x6c4   :  { %v779_v28 = vsel %vm239_vm14, %v767_v22, -inf }
 0x6c5   :  { %780 = vmax.xlane.f32.xlu0 %v779_v28 }
 0x6c6   :  { %1490 = vmatmul.msk.f32.gmra.mxu0 %vm239_vm14, %v973_v29 }
 0x6d1   :  { %v964_v13 = vpop.f32.mrf.mxu3 }
 0x6d2   :  { %v1009_v30 = vsel %vm239_vm14, %v964_v13, -inf }
 0x6d3   :  { %1010 = vmax.xlane.f32.xlu1 %v1009_v30 }
 0x6d9   :  { %v967_v31 = vpop.f32.mrf.mxu3  ;;  %1532 = vrot.lane.b32.xlu0 %v1933_v23, %s1674_s20  ;;  %s1679_s20 = smov 8  }
 0x6da   :  { %v1012_v32 = vsel %vm239_vm14, %v967_v31, -inf }
 0x6db   :  { %1013 = vmax.xlane.f32.xlu1 %v1012_v32 }
 0x6e5   :  { %v495_v33 = vpop.xlane.xlu2 %494 }
 0x6e6   :  { %v503_v34 = vsub.f32 %v448_v4, %v495_v33 }
 0x6e8   :  { %v508_v35 = vmul.f32 1.442695, %v503_v34 }
 0x6ea   :  { %1599 = vpow2.f32 %v508_v35 }
 0x6f0   :  { %v1600_v37 = vpop.eup %1599 }
 0x6f1   :  { %v517_v38 = vsel %vm239_vm14, %v1600_v37, 0.0 }
 0x6f2   :  { %518 = vadd.xlane.f32.xlu1 %v517_v38 }
 0x72b   :  { %v2003_v39 = vpop.f32.mrf.mxu0 }
 0x72e   :  { %v778_v27 = vpop.xlane.xlu1 %777 }
 0x72f   :  { %v784_v47 = vsub.f32 %v764_v20, %v778_v27  ;;  %v884_v27 = vld [vmem:[%s2200_s3 + $0x20] sm:$0xff] }
 0x731   :  { %v790_v54 = vmul.f32 1.442695, %v784_v47 }
 0x733   :  { %v2005_v43 = vpop.f32.mrf.mxu0 }
 0x738   :  { %v781_v40 = vpop.xlane.xlu0 %780 }
 0x739   :  { %v785_v41 = vsub.f32 %v767_v22, %v781_v40 }
 0x73b   :  { %v792_v42 = vmul.f32 1.442695, %v785_v41  ;;  %v1003_v48 = vpop.f32.mrf.mxu0 }
 0x73c   :  { %v1015_v52 = vsel %vm239_vm14, %v1003_v48, -inf }
 0x73d   :  { %1601 = vpow2.f32 %v792_v42  ;;  %v885_v42 = vld [vmem:[%s2200_s3 + $0x28] sm:$0xff] }
 0x743   :  { %v2007_v44 = vpop.eup %1601  ;;  %v1006_v60 = vpop.f32.mrf.mxu0 }
 0x744   :  { %v803_v45 = vsel %vm239_vm14, %v2007_v44, 0.0  ;;  %v1018_v0 = vsel %vm239_vm14, %v1006_v60, -inf }
 0x745   :  { %804 = vadd.xlane.f32.xlu1 %v803_v45 }
 0x746   :  { %v1011_v46 = vpop.xlane.xlu1 %1010 }
 0x747   :  { %v1021_v36 = vsub.f32 %v964_v13, %v1011_v46 }
 0x749   :  { %v1025_v49 = vmul.f32 1.442695, %v1021_v36  ;;  %v1124_v36 = vld [vmem:[%s2200_s3 + $0x38] sm:$0xff] }
 0x74a   :  { %1151 = vmatpush.msrb.mxu0 %v1124_v36  ;;  %v1264_v36 = vld [vmem:[%s2200_s3 + $0x58] sm:$0xff] }
 0x74b   :  { %1603 = vpow2.f32 %v1025_v49  ;;  %v1533_v51 = vpop.permute.xlu0 %1532 }
 0x74c   :  { %v1534_v50 = vunpack.i.l.bf16 %v1533_v51  ;;  %v1535_v55 = vunpack.i.h.bf16 %v1533_v51  ;;  %1605 = vpow2.f32 %v790_v54 }
 0x74d   :  { %1016 = vmax.xlane.f32.xlu1 %v1015_v52 }
 0x74e   :  { %v1014_v56 = vpop.xlane.xlu1 %1013  ;;  %875 = vmatpush.msrb.mxu1 %v1534_v50 }
 0x74f   :  { %v1022_v61 = vsub.f32 %v967_v31, %v1014_v56 }
 0x750   :  { %876 = vmatpush.msrb.mxu1 %v1535_v55 }
 0x751   :  { %v2018_v59 = vpop.eup %1603  ;;  %v1027_v1 = vmul.f32 1.442695, %v1022_v61 }
 0x752   :  { %v1033_v62 = vsel %vm239_vm14, %v2018_v59, 0.0  ;;  %v1606_v2 = vpop.eup %1605 }
 0x753   :  { %1034 = vadd.xlane.f32.xlu2 %v1033_v62  ;;  %1607 = vpow2.f32 %v1027_v1  ;;  %v800_v3 = vsel %vm239_vm14, %v1606_v2, 0.0  ;;  %v1178_v62 = vld [vmem:[%s2199_s2 + $0x18] sm:$0xff]  ;;  %v1176_v1 = vld [vmem:[%s2199_s2 + $0x8] sm:$0xff] }
 0x755   :  { %1019 = vmax.xlane.f32.xlu1 %v1018_v0  ;;  %v1177_v0 = vld [vmem:[%s2199_s2 + $0x10] sm:$0xff] }
 0x759   :  { %v1608_v4 = vpop.eup %1607 }
 0x75a   :  { %v1036_v5 = vsel %vm239_vm14, %v1608_v4, 0.0 }
 0x75b   :  { %801 = vadd.xlane.f32.xlu2 %v800_v3 }
 0x763   :  { %1037 = vadd.xlane.f32.xlu2 %v1036_v5 }
 0x765   :  { %v519_v6 = vpop.xlane.xlu1 %518 }
 0x766   :  { %1609 = vrcp.f32 %v519_v6 }
 0x76c   :  { %v1610_v8 = vpop.eup %1609 }
 0x76d   :  { %v531_v9 = vmul.f32 %v1610_v8, %v1600_v37 }
 0x76e   :  { %1537 = vrot.lane.b32.xlu1 %v1836_v53, %s1676_s26 }
 0x76f   :  { %1456 = vmatmul.msk.f32.vlgmr.msra.gmra.mxu2 %vm239_vm14, %v531_v9 }
 0x770   :  { %912 = vmatpush.msra.mxu2 %v885_v42 }
 0x772   :  { %913 = vmatpush.msra.mxu2 %v884_v27  ;;  %v1266_v27 = vld [vmem:[%s2200_s3 + $0x68] sm:$0xff] }
 0x777   :  { %1459 = vmatmul.msk.f32.vlgmr.msrb.gmra.mxu2 %vm239_vm14, %v1941_v26 }
 0x77b   :  { %1542 = vrot.lane.b32.xlu2 %v1933_v23, %s1676_s26 }
 0x7b8   :  { %v805_v11 = vpop.xlane.xlu1 %804 }
 0x7c0   :  { %v1017_v12 = vpop.xlane.xlu1 %1016 }
 0x7c1   :  { %v1023_v63 = vsub.f32 %v1003_v48, %v1017_v12  ;;  %v1548_v12 = vld [vmem:[%s2201_s4 + $0x2] ss:$0 sm:$0xff] }
 0x7c3   :  { %v1029_v17 = vmul.f32 1.442695, %v1023_v63 }
 0x7c5   :  { %1611 = vpow2.f32 %v1029_v17 }
 0x7c6   :  { %v1035_v18 = vpop.xlane.xlu2 %1034 }
 0x7c8   :  { %v1020_v20 = vpop.xlane.xlu1 %1019 }
 0x7c9   :  { %v1024_v21 = vsub.f32 %v1006_v60, %v1020_v20  ;;  %v1179_v60 = vld [vmem:[%s2199_s2 + $0x20] sm:$0xff] }
 0x7cb   :  { %v1612_v24 = vpop.eup %1611  ;;  %v1031_v22 = vmul.f32 1.442695, %v1024_v21 }
 0x7cc   :  { %v1039_v53 = vsel %vm239_vm14, %v1612_v24, 0.0 }
 0x7cd   :  { %1613 = vpow2.f32 %v1031_v22  ;;  %1040 = vadd.xlane.f32.xlu0 %v1039_v53 }
 0x7ce   :  { %v802_v28 = vpop.xlane.xlu2 %801 }
 0x7cf   :  { %1615 = vrcp.f32 %v802_v28 }
 0x7d0   :  { %1617 = vrcp.f32 %v805_v11 }
 0x7d1   :  { %1619 = vrcp.f32 %v1035_v18 }
 0x7d3   :  { %v1614_v26 = vpop.eup %1613 }
 0x7d4   :  { %v1042_v29 = vsel %vm239_vm14, %v1614_v26, 0.0 }
 0x7d5   :  { %v1616_v23 = vpop.eup %1615  ;;  %1043 = vadd.xlane.f32.xlu1 %v1042_v29  ;;  %v1273_v29 = vld [vmem:[%s2200_s3 + $0xa0] sm:$0xff] }
 0x7d6   :  { %v812_v13 = vmul.f32 %v1616_v23, %v1606_v2  ;;  %v1038_v30 = vpop.xlane.xlu2 %1037  ;;  %v1618_v31 = vpop.eup %1617  ;;  %v1175_v2 = vld [vmem:[%s2199_s2] sm:$0xff] }
 0x7d7   :  { %v813_v33 = vmul.f32 %v1618_v31, %v2007_v44  ;;  %v1620_v40 = vpop.eup %1619  ;;  %1621 = vrcp.f32 %v1038_v30  ;;  %v1271_v31 = vld [vmem:[%s2200_s3 + $0x90] sm:$0xff] }
 0x7d8   :  { %1477 = vmatmul.msk.f32.vlgmr.msrb.gmra.mxu1 %vm239_vm14, %v812_v13  ;;  %v1049_v44 = vmul.f32 %v1620_v40, %v2018_v59  ;;  %v1180_v59 = vld [vmem:[%s2199_s2 + $0x28] sm:$0xff]  ;;  %v1272_v13 = vld [vmem:[%s2200_s3 + $0x98] sm:$0xff]  ;;  %v1267_v40 = vld [vmem:[%s2200_s3 + $0x70] sm:$0xff] }
 0x7dd   :  { %v1622_v45 = vpop.eup %1621 }
 0x7de   :  { %v1543_v32 = vpop.permute.xlu2 %1542  ;;  %v1050_v46 = vmul.f32 %v1622_v45, %v1608_v4  ;;  %v1265_v45 = vld [vmem:[%s2200_s3 + $0x60] sm:$0xff] }
 0x7df   :  { %v1544_v34 = vunpack.i.l.bf16 %v1543_v32  ;;  %v1545_v37 = vunpack.i.h.bf16 %v1543_v32 }
 0x7e0   :  { %v1538_v35 = vpop.permute.xlu1 %1537  ;;  %1478 = vmatmul.msk.f32.gmra.mxu1 %vm239_vm14, %v813_v33  ;;  %v1270_v33 = vld [vmem:[%s2200_s3 + $0x88] sm:$0xff] }
 0x7e1   :  { %v1539_v38 = vunpack.i.l.bf16 %v1538_v35  ;;  %1114 = vmatpush.msra.mxu3 %v1544_v34  ;;  %v1540_v41 = vunpack.i.h.bf16 %v1538_v35 }
 0x7e3   :  { %1079 = vmatpush.msra.mxu1 %v1539_v38  ;;  %1115 = vmatpush.msra.mxu3 %v1545_v37  ;;  %v1269_v37 = vld [vmem:[%s2200_s3 + $0x80] sm:$0xff] }
 0x7e5   :  { %1080 = vmatpush.msra.mxu1 %v1540_v41 }
 0x7e7   :  { %1204 = vmatpush.msrb.mxu1 %v1182_v57 }
 0x7e8   :  { %1491 = vmatmul.msk.f32.vlgmr.msra.gmra.mxu1 %vm239_vm14, %v1049_v44 }
 0x7e9   :  { %1205 = vmatpush.msrb.mxu1 %v1181_v58 }
 0x7eb   :  { %1206 = vmatpush.msrb.mxu1 %v1180_v59 }
 0x7ed   :  { %1207 = vmatpush.msrb.mxu1 %v1179_v60 }
 0x7ef   :  { %1208 = vmatpush.msrb.mxu1 %v1178_v62 }
 0x7f0   :  { %1492 = vmatmul.msk.f32.gmra.mxu1 %vm239_vm14, %v1050_v46 }
 0x7f1   :  { %1209 = vmatpush.msrb.mxu1 %v1177_v0 }
 0x7f2   :  { %v568_v48 = vpop.f32.mrf.mxu2 }
 0x7f3   :  { %1460 = vmatmul.msk.f32.gmra.mxu2 %vm239_vm14, %v568_v48  ;;  %1210 = vmatpush.msrb.mxu1 %v1176_v1 }
 0x7f5   :  { %1211 = vmatpush.msrb.mxu1 %v1175_v2 }
 0x7fa   :  { %v639_v56 = vpop.f32.mrf.mxu2 }
 0x7fb   :  { %1461 = vmatmul.msk.f32.gmra.mxu2 %vm239_vm14, %v1978_v7  ;;  %v1123_v7 = vld [vmem:[%s2200_s3 + $0x30] sm:$0xff]  ;;  %v681_v9 = vadd.f32 %v1980_v15, %v639_v56  ;;  %v1276_v15 = vld [vmem:[%s2200_s3 + $0xb8] sm:$0xff] }
 0x7fc   :  { %1152 = vmatpush.msrb.mxu0 %v1123_v7  ;;  %1278 = vmatpush.msrb.mxu2 %v1276_v15  ;;  %v1262_v7 = vld [vmem:[%s2200_s3 + $0x48] sm:$0xff] }
 0x803   :  { %1462 = vmatmul.msk.f32.gmra.mxu2 %vm239_vm14, %v1984_v16 }
 0x80b   :  { %1479 = vmatmul.msk.f32.vlgmr.msra.gmra.mxu2 %vm239_vm14, %v2003_v39 }
 0x813   :  { %1480 = vmatmul.msk.f32.gmra.mxu2 %vm239_vm14, %v2005_v43 }
 0x840   :  { %v1041_v47 = vpop.xlane.xlu0 %1040 }
 0x841   :  { %1623 = vrcp.f32 %v1041_v47  ;;  %v1263_v47 = vld [vmem:[%s2200_s3 + $0x50] sm:$0xff] }
 0x847   :  { %v1624_v49 = vpop.eup %1623 }
 0x848   :  { %v1051_v16 = vmul.f32 %v1624_v49, %v1612_v24  ;;  %v1044_v51 = vpop.xlane.xlu1 %1043  ;;  %v1261_v49 = vld [vmem:[%s2200_s3 + $0x40] sm:$0xff] }
 0x849   :  { %1625 = vrcp.f32 %v1044_v51 }
 0x84a   :  { %1493 = vmatmul.msk.f32.vlgmr.msra.gmra.mxu3 %vm239_vm14, %v1051_v16  ;;  %v1549_v16 = vld [vmem:[%s2202_s5 + $0x1] ss:$0 sm:$0xff] }
 0x84f   :  { %v1626_v39 = vpop.eup %1625 }
 0x850   :  { %v1052_v43 = vmul.f32 %v1626_v39, %v1614_v26  ;;  %v1275_v26 = vld [vmem:[%s2200_s3 + $0xb0] sm:$0xff] }
 0x851   :  { %1279 = vmatpush.msrb.mxu2 %v1275_v26 }
 0x852   :  { %1494 = vmatmul.msk.f32.gmra.mxu3 %vm239_vm14, %v1052_v43 }
 0x855   :  { %v878_v50 = vpop.f32.mrf.mxu1 }
 0x856   :  { %1481 = vmatmul.msk.f32.gmra.mxu2 %vm239_vm14, %v878_v50 }
 0x85d   :  { %v881_v52 = vpop.f32.mrf.mxu1 }
 0x85e   :  { %1482 = vmatmul.msk.f32.gmra.mxu2 %vm239_vm14, %v881_v52 }
 0x865   :  { %v1082_v54 = vpop.f32.mrf.mxu1 }
 0x866   :  { %1495 = vmatmul.msk.f32.vlgmr.msrb.gmra.mxu0 %vm239_vm14, %v1082_v54 }
 0x86d   :  { %v1085_v55 = vpop.f32.mrf.mxu1 }
 0x86e   :  { %1496 = vmatmul.msk.f32.gmra.mxu0 %vm239_vm14, %v1085_v55 }
 0x876   :  { %v642_v61 = vpop.f32.mrf.mxu2 }
 0x877   :  { %v684_v21 = vadd.f32 %v1988_v19, %v642_v61  ;;  %v1274_v19 = vld [vmem:[%s2200_s3 + $0xa8] sm:$0xff] }
 0x878   :  { %1280 = vmatpush.msrb.mxu2 %v1274_v19 }
 0x87a   :  { %1281 = vmatpush.msrb.mxu2 %v1273_v29 }
 0x87c   :  { %1282 = vmatpush.msrb.mxu2 %v1272_v13 }
 0x87e   :  { %v645_v3 = vpop.f32.mrf.mxu2  ;;  %1283 = vmatpush.msrb.mxu2 %v1271_v31 }
 0x87f   :  { %v687_v30 = vadd.f32 %v1992_v25, %v645_v3  ;;  %v1268_v25 = vld [vmem:[%s2200_s3 + $0x78] sm:$0xff] }
 0x880   :  { %1284 = vmatpush.msrb.mxu2 %v1270_v33 }
 0x882   :  { %1285 = vmatpush.msrb.mxu2 %v1269_v37 }
 0x884   :  { %1286 = vmatpush.msrb.mxu2 %v1268_v25 }
 0x886   :  { %v648_v5 = vpop.f32.mrf.mxu2  ;;  %1287 = vmatpush.msrb.mxu2 %v1267_v40 }
 0x887   :  { %v690_v42 = vadd.f32 %v1996_v10, %v648_v5 }
 0x888   :  { %1288 = vmatpush.msrb.mxu2 %v1266_v27 }
 0x88a   :  { %1289 = vmatpush.msrb.mxu2 %v1265_v45 }
 0x88c   :  { %1290 = vmatpush.msrb.mxu2 %v1264_v36 }
 0x88e   :  { %v915_v8 = vpop.f32.mrf.mxu2  ;;  %1291 = vmatpush.msrb.mxu2 %v1263_v47 }
 0x88f   :  { %v927_v11 = vadd.f32 %v915_v8, %v681_v9 }
 0x890   :  { %1292 = vmatpush.msrb.mxu2 %v1262_v7 }
 0x892   :  { %1293 = vmatpush.msrb.mxu2 %v1261_v49 }
 0x896   :  { %v918_v20 = vpop.f32.mrf.mxu2 }
 0x897   :  { %v928_v24 = vadd.f32 %v918_v20, %v684_v21 }
 0x8cd   :  { %v1117_v4 = vpop.f32.mrf.mxu3 }
 0x8ce   :  { %1497 = vmatmul.msk.f32.gmra.mxu0 %vm239_vm14, %v1117_v4 }
 0x8d5   :  { %v1120_v6 = vpop.f32.mrf.mxu3 }
 0x8d6   :  { %1498 = vmatmul.msk.f32.gmra.mxu0 %vm239_vm14, %v1120_v6 }
 0x8d9   :  { %v921_v23 = vpop.f32.mrf.mxu2 }
 0x8da   :  { %v929_v32 = vadd.f32 %v921_v23, %v687_v30 }
 0x8e1   :  { %v924_v41 = vpop.f32.mrf.mxu2 }
 0x8e2   :  { %v930_v44 = vadd.f32 %v924_v41, %v690_v42 }
 0x8e3   :  { %v1154_v63 = vpop.f32.mrf.mxu0 }
 0x8e4   :  { %v1166_v17 = vadd.f32 %v1154_v63, %v927_v11 }
 0x8e6   :  { %v1171_v18 = vadd.f32 %v1548_v12, %v1166_v17 }
 0x8e8   :  { %1499 = vmatmul.msk.f32.vlgmr.msrb.gmra.mxu1 %vm36_vm0, %v1171_v18 }
 0x8eb   :  { %v1157_v22 = vpop.f32.mrf.mxu0 }
 0x8ec   :  { %v1167_v53 = vadd.f32 %v1157_v22, %v928_v24 }
 0x8ee   :  { %v1172_v28 = vadd.f32 %v1548_v12, %v1167_v53 }
 0x8f0   :  { %1500 = vmatmul.msk.f32.gmra.mxu1 %vm36_vm0, %v1172_v28 }
 0x94b   :  { %v1160_v34 = vpop.f32.mrf.mxu0 }
 0x94c   :  { %v1168_v35 = vadd.f32 %v1160_v34, %v929_v32  ;;  %v1550_v34 = vld [vmem:[%s2201_s4 + $0x3] ss:$0 sm:$0xff] }
 0x94e   :  { %v1173_v38 = vadd.f32 %v1548_v12, %v1168_v35 }
 0x950   :  { %1501 = vmatmul.msk.f32.gmra.mxu1 %vm36_vm0, %v1173_v38 }
 0x953   :  { %v1163_v46 = vpop.f32.mrf.mxu0 }
 0x954   :  { %v1169_v48 = vadd.f32 %v1163_v46, %v930_v44 }
 0x956   :  { %v1174_v10 = vadd.f32 %v1548_v12, %v1169_v48 }
 0x958   :  { %1502 = vmatmul.msk.f32.gmra.mxu1 %vm36_vm0, %v1174_v10 }
 0x965   :  { %v1213_v51 = vpop.f32.mrf.mxu1 }
 0x966   :  { %v1214_v39 = vadd.f32 %v1549_v16, %v1213_v51 }
 0x968   :  { %v1229_v43 = vmul.f32 0.044715, %v1214_v39  ;;  %v1225_v1 = vmul.f32 0.5, %v1214_v39 }
 0x96a   :  { %v1233_v50 = vmul.f32 %v1229_v43, %v1214_v39 }
 0x96c   :  { %v1237_v52 = vmul.f32 %v1233_v50, %v1214_v39 }
 0x96d   :  { %v1216_v54 = vpop.f32.mrf.mxu1 }
 0x96e   :  { %v1217_v55 = vadd.f32 %v1549_v16, %v1216_v54  ;;  %v1241_v56 = vadd.f32 %v1237_v52, %v1214_v39 }
 0x970   :  { %v1245_v57 = vmul.f32 0.7978846, %v1241_v56  ;;  %v1230_v58 = vmul.f32 0.044715, %v1217_v55  ;;  %v1226_v5 = vmul.f32 0.5, %v1217_v55 }
 0x972   :  { %1627 = vtanh.f32 %v1245_v57  ;;  %v1234_v59 = vmul.f32 %v1230_v58, %v1217_v55 }
 0x974   :  { %v1238_v60 = vmul.f32 %v1234_v59, %v1217_v55 }
 0x976   :  { %v1242_v61 = vadd.f32 %v1238_v60, %v1217_v55 }
 0x978   :  { %v1628_v62 = vpop.eup %1627  ;;  %v1246_v0 = vmul.f32 0.7978846, %v1242_v61 }
 0x979   :  { %v1253_v2 = vadd.f32 1.0, %v1628_v62 }
 0x97a   :  { %1629 = vtanh.f32 %v1246_v0 }
 0x97b   :  { %v1257_v3 = vmul.f32 %v1253_v2, %v1225_v1 }
 0x97d   :  { %1294 = vmatmul.f32.vlgmr.msrb.gmra.mxu2 %v1257_v3 }
 0x980   :  { %v1630_v4 = vpop.eup %1629 }
 0x981   :  { %v1254_v6 = vadd.f32 1.0, %v1630_v4 }
 0x983   :  { %v1258_v8 = vmul.f32 %v1254_v6, %v1226_v5 }
 0x985   :  { %1297 = vmatmul.f32.gmra.mxu2 %v1258_v8 }
 0x9cd   :  { %v1219_v9 = vpop.f32.mrf.mxu1 }
 0x9ce   :  { %v1220_v11 = vadd.f32 %v1549_v16, %v1219_v9 }
 0x9d0   :  { %v1231_v12 = vmul.f32 0.044715, %v1220_v11  ;;  %v1227_v29 = vmul.f32 0.5, %v1220_v11 }
 0x9d2   :  { %v1235_v63 = vmul.f32 %v1231_v12, %v1220_v11 }
 0x9d4   :  { %v1239_v17 = vmul.f32 %v1235_v63, %v1220_v11 }
 0x9d5   :  { %v1222_v18 = vpop.f32.mrf.mxu1 }
 0x9d6   :  { %v1223_v20 = vadd.f32 %v1549_v16, %v1222_v18  ;;  %v1243_v21 = vadd.f32 %v1239_v17, %v1220_v11 }
 0x9d8   :  { %v1247_v24 = vmul.f32 0.7978846, %v1243_v21  ;;  %v1232_v22 = vmul.f32 0.044715, %v1223_v20  ;;  %v1228_v31 = vmul.f32 0.5, %v1223_v20 }
 0x9da   :  { %1631 = vtanh.f32 %v1247_v24  ;;  %v1236_v53 = vmul.f32 %v1232_v22, %v1223_v20  ;;  %v1552_v22 = vld [vmem:[%s2201_s4 + $0x5] ss:$0 sm:$0xff] }
 0x9dc   :  { %v1240_v28 = vmul.f32 %v1236_v53, %v1223_v20 }
 0x9de   :  { %v1244_v15 = vadd.f32 %v1240_v28, %v1223_v20  ;;  %v1551_v20 = vld [vmem:[%s2201_s4 + $0x4] ss:$0 sm:$0xff]  ;;  %s1677_s4 = smov [#allocation2]  }
 0x9df   :  { %s1413_s15 = sshll.u32 %s1677_s4, 4  ;;  %s1414_s15 = int_to_ptr.vmem [resolvable:$true] %s1413_s15 }
 0x9e0   :  { %v1632_v26 = vpop.eup %1631  ;;  %v1248_v19 = vmul.f32 0.7978846, %v1244_v15 }
 0x9e1   :  { %v1255_v23 = vadd.f32 1.0, %v1632_v26 }
 0x9e2   :  { %1633 = vtanh.f32 %v1248_v19 }
 0x9e3   :  { %v1259_v13 = vmul.f32 %v1255_v23, %v1227_v29 }
 0x9e5   :  { %1300 = vmatmul.f32.gmra.mxu2 %v1259_v13 }
 0x9e8   :  { %v1634_v30 = vpop.eup %1633 }
 0x9e9   :  { %v1256_v32 = vadd.f32 1.0, %v1634_v30 }
 0x9eb   :  { %v1260_v33 = vmul.f32 %v1256_v32, %v1228_v31 }
 0x9ed   :  { %1303 = vmatmul.f32.gmra.mxu2 %v1260_v33 }
 0xa00   :  { %v1295_v35 = vpop.f32.mrf.mxu2 }
 0xa01   :  { %v1296_v37 = vadd.f32 %v1550_v34, %v1295_v35 }
 0xa03   :  { %v1307_v38 = vsel %vm36_vm0, %v1296_v37, 0.0 }
 0xa04   :  { %1308 = vadd.xlane.f32.xlu2 %v1307_v38 }
 0xa08   :  { %v1298_v25 = vpop.f32.mrf.mxu2 }
 0xa09   :  { %v1299_v40 = vadd.f32 %v1550_v34, %v1298_v25 }
 0xa0b   :  { %v1310_v41 = vsel %vm36_vm0, %v1299_v40, 0.0 }
 0xa0c   :  { %1311 = vadd.xlane.f32.xlu0 %v1310_v41 }
 0xa68   :  { %v1301_v42 = vpop.f32.mrf.mxu2 }
 0xa69   :  { %v1302_v27 = vadd.f32 %v1550_v34, %v1301_v42 }
 0xa6b   :  { %v1313_v44 = vsel %vm36_vm0, %v1302_v27, 0.0 }
 0xa6c   :  { %1314 = vadd.xlane.f32.xlu0 %v1313_v44 }
 0xa70   :  { %v1304_v45 = vpop.f32.mrf.mxu2 }
 0xa71   :  { %v1305_v46 = vadd.f32 %v1550_v34, %v1304_v45 }
 0xa73   :  { %v1316_v48 = vsel %vm36_vm0, %v1305_v46, 0.0 }
 0xa74   :  { %1317 = vadd.xlane.f32.xlu0 %v1316_v48 }
 0xa77   :  { %v1309_v36 = vpop.xlane.xlu2 %1308 }
 0xa78   :  { %v1319_v10 = vmul.f32 %v1309_v36, %v1731_v14 }
 0xa7a   :  { %v1323_v47 = vsub.f32 %v1296_v37, %v1319_v10 }
 0xa7c   :  { %v1327_v7 = vmul.f32 %v1323_v47, %v1323_v47 }
 0xa7e   :  { %v1331_v49 = vsel %vm36_vm0, %v1327_v7, 0.0 }
 0xa7f   :  { %v1312_v16 = vpop.xlane.xlu0 %1311  ;;  %1332 = vadd.xlane.f32.xlu1 %v1331_v49 }
 0xa80   :  { %v1320_v51 = vmul.f32 %v1312_v16, %v1731_v14 }
 0xa82   :  { %v1324_v39 = vsub.f32 %v1299_v40, %v1320_v51 }
 0xa84   :  { %v1328_v43 = vmul.f32 %v1324_v39, %v1324_v39 }
 0xa86   :  { %v1334_v50 = vsel %vm36_vm0, %v1328_v43, 0.0 }
 0xa87   :  { %1335 = vadd.xlane.f32.xlu2 %v1334_v50 }
 0xadf   :  { %v1315_v52 = vpop.xlane.xlu0 %1314 }
 0xae0   :  { %v1321_v54 = vmul.f32 %v1315_v52, %v1731_v14 }
 0xae2   :  { %v2167_v55 = vsub.f32 %v1302_v27, %v1321_v54 }
 0xae4   :  { %v1329_v56 = vmul.f32 %v2167_v55, %v2167_v55 }
 0xae6   :  { %v1337_v57 = vsel %vm36_vm0, %v1329_v56, 0.0 }
 0xae7   :  { %1338 = vadd.xlane.f32.xlu0 %v1337_v57  ;;  %v1318_v58 = vpop.xlane.xlu0 %1317 }
 0xae8   :  { %v1322_v59 = vmul.f32 %v1318_v58, %v1731_v14 }
 0xaea   :  { %v2173_v60 = vsub.f32 %v1305_v46, %v1322_v59 }
 0xaec   :  { %v1330_v61 = vmul.f32 %v2173_v60, %v2173_v60 }
 0xaee   :  { %v1340_v62 = vsel %vm36_vm0, %v1330_v61, 0.0 }
 0xaef   :  { %1341 = vadd.xlane.f32.xlu1 %v1340_v62 }
 0xaf2   :  { %v1333_v0 = vpop.xlane.xlu1 %1332 }
 0xaf3   :  { %v1343_v1 = vmul.f32 %v1333_v0, %v1731_v14 }
 0xaf5   :  { %v1347_v2 = vadd.f32 1e-06, %v1343_v1 }
 0xaf7   :  { %1635 = vrsqrt.f32 %v1347_v2  ;;  %vm1357_vm1 = vweird.f32 %v1347_v2 }
 0xafa   :  { %v1336_v3 = vpop.xlane.xlu2 %1335 }
 0xafb   :  { %v1344_v4 = vmul.f32 %v1336_v3, %v1731_v14 }
 0xafd   :  { %v1636_v5 = vpop.eup %1635  ;;  %v1348_v6 = vadd.f32 1e-06, %v1344_v4 }
 0xafe   :  { %v1352_v8 = vmul.f32 %v1636_v5, %v1347_v2  ;;  %vm1358_vm15 = vweird.f32 %v1636_v5 }
 0xaff   :  { %1637 = vrsqrt.f32 %v1348_v6  ;;  %vm1359_vm2 = vmor %vm1357_vm1, %vm1358_vm15  ;;  %vm1367_vm4 = vweird.f32 %v1348_v6 }
 0xb00   :  { %v1353_v9 = vmul.f32 %v1636_v5, %v1352_v8 }
 0xb02   :  { %v1354_v11 = vmul.f32 0.5, %v1353_v9 }
 0xb04   :  { %v1355_v12 = vsub.f32 1.5, %v1354_v11 }
 0xb05   :  { %v1638_v63 = vpop.eup %1637 }
 0xb06   :  { %v1356_v17 = vmul.f32 %v1636_v5, %v1355_v12  ;;  %v1362_v18 = vmul.f32 %v1638_v63, %v1348_v6  ;;  %vm1368_vm3 = vweird.f32 %v1638_v63 }
 0xb07   :  { %vm1369_vm5 = vmor %vm1367_vm4, %vm1368_vm3 }
 0xb08   :  { %v1360_v21 = vsel %vm1359_vm2, %v1636_v5, %v1356_v17  ;;  %v1363_v24 = vmul.f32 %v1638_v63, %v1362_v18 }
 0xb09   :  { %v1391_v53 = vmul.f32 %v1360_v21, %v1323_v47 }
 0xb0a   :  { %v1364_v28 = vmul.f32 0.5, %v1363_v24 }
 0xb0b   :  { %v1396_v15 = vmul.f32 %v1551_v20, %v1391_v53 }
 0xb0c   :  { %v1365_v26 = vsub.f32 1.5, %v1364_v28 }
 0xb0d   :  { %v1401_v19 = vadd.f32 %v1552_v22, %v1396_v15 }
 0xb0e   :  { %v1366_v29 = vmul.f32 %v1638_v63, %v1365_v26 }
 0xb0f   :  { %1405 = vst.msk [vmem:[#allocation2] sm:$0xff] %vm36_vm0, %v1401_v19 }
 0xb10   :  { %v1370_v23 = vsel %vm1369_vm5, %v1638_v63, %v1366_v29 }
 0xb11   :  { %v1392_v13 = vmul.f32 %v1370_v23, %v1324_v39 }
 0xb13   :  { %v1397_v30 = vmul.f32 %v1551_v20, %v1392_v13 }
 0xb15   :  { %v1402_v31 = vadd.f32 %v1552_v22, %v1397_v30 }
 0xb17   :  { %1406 = vst.msk [vmem:[#allocation2 + $0x8] sm:$0xff] %vm36_vm0, %v1402_v31 }
 0xb5a   :  { %v1339_v32 = vpop.xlane.xlu0 %1338 }
 0xb5b   :  { %v1345_v33 = vmul.f32 %v1339_v32, %v1731_v14 }
 0xb5d   :  { %v1349_v34 = vadd.f32 1e-06, %v1345_v33 }
 0xb5f   :  { %1639 = vrsqrt.f32 %v1349_v34  ;;  %vm1377_vm7 = vweird.f32 %v1349_v34 }
 0xb62   :  { %v1342_v35 = vpop.xlane.xlu1 %1341 }
 0xb63   :  { %v1346_v37 = vmul.f32 %v1342_v35, %v1731_v14 }
 0xb65   :  { %v1640_v38 = vpop.eup %1639  ;;  %v1350_v25 = vadd.f32 1e-06, %v1346_v37 }
 0xb66   :  { %v1372_v40 = vmul.f32 %v1640_v38, %v1349_v34  ;;  %vm1378_vm6 = vweird.f32 %v1640_v38 }
 0xb67   :  { %1641 = vrsqrt.f32 %v1350_v25  ;;  %vm1379_vm8 = vmor %vm1377_vm7, %vm1378_vm6  ;;  %vm1387_vm10 = vweird.f32 %v1350_v25 }
 0xb68   :  { %v1373_v41 = vmul.f32 %v1640_v38, %v1372_v40 }
 0xb6a   :  { %v1374_v42 = vmul.f32 0.5, %v1373_v41 }
 0xb6c   :  { %v1375_v27 = vsub.f32 1.5, %v1374_v42 }
 0xb6d   :  { %v1642_v44 = vpop.eup %1641 }
 0xb6e   :  { %v1376_v45 = vmul.f32 %v1640_v38, %v1375_v27  ;;  %v1382_v46 = vmul.f32 %v1642_v44, %v1350_v25  ;;  %vm1388_vm9 = vweird.f32 %v1642_v44 }
 0xb6f   :  { %vm1389_vm11 = vmor %vm1387_vm10, %vm1388_vm9 }
 0xb70   :  { %v1380_v48 = vsel %vm1379_vm8, %v1640_v38, %v1376_v45  ;;  %v1383_v36 = vmul.f32 %v1642_v44, %v1382_v46 }
 0xb71   :  { %v1393_v10 = vmul.f32 %v1380_v48, %v2167_v55 }
 0xb72   :  { %v1384_v47 = vmul.f32 0.5, %v1383_v36 }
 0xb73   :  { %v1398_v7 = vmul.f32 %v1551_v20, %v1393_v10 }
 0xb74   :  { %v1385_v14 = vsub.f32 1.5, %v1384_v47 }
 0xb75   :  { %v1403_v49 = vadd.f32 %v1552_v22, %v1398_v7 }
 0xb76   :  { %v1386_v16 = vmul.f32 %v1642_v44, %v1385_v14 }
 0xb77   :  { %1407 = vst.msk [vmem:[#allocation2 + $0x10] sm:$0xff] %vm36_vm0, %v1403_v49 }
 0xb78   :  { %v1390_v51 = vsel %vm1389_vm11, %v1642_v44, %v1386_v16 }
 0xb79   :  { %v1394_v39 = vmul.f32 %v1390_v51, %v2173_v60 }
 0xb7b   :  { %v1399_v43 = vmul.f32 %v1551_v20, %v1394_v39 }
 0xb7d   :  { %v1404_v50 = vadd.f32 %v1552_v22, %v1399_v43 }
 0xb7f   :  { %1408 = vst.msk [vmem:[#allocation2 + $0x18] sm:$0xff] %vm36_vm0, %v1404_v50 }
 0xb80   :  { %1421 = dma.vmem_to_hbm [thread:$0]  %s1414_s15, 512, %s1416_s18, [#allocation3], %s1678_s19, %s1678_s19, %s1679_s20  }
 0xb81   :  { %1667 = dma.done.wait [#allocation3], 512  }
 0xb82   :  { %1668 = vsyncadd [#allocation3], 4294966784 }
 0xb83   :  { %1426 = vsyncpa [#allocation3], 1 }

</bundles_post_ra>
